<compile_context>
chip_gen: v6e
topology: v6e:2x2x1
jax: 0.10.0
libtpu: 0.0.40
codegen_flags: <defaults>
</compile_context>

<pallas_src>
import jax
import jax.numpy as jnp
from jax.experimental import pallas as pl
from jax.experimental.pallas import tpu as pltpu

# ---- module hyper-parameters (small, consistent with Attention.__init__) ----
DIM = 32          # model dim
HEADS = 4         # heads
DIM_HEAD = 8      # dim_head
INNER = HEADS * DIM_HEAD          # 32
SCALE = DIM_HEAD ** (-0.5)
B, P, N = 2, 4, 16                # batch, patches, tokens-per-patch


def attention_kernel(x_ref, wqkv_ref, wout_ref, o_ref):
    # x_ref: (bp_blk, N, DIM)  wqkv_ref: (DIM, 3*INNER)  wout_ref: (INNER, DIM)
    bp_blk, n, dim = x_ref.shape
    x2d = x_ref[...].reshape(bp_blk * n, dim)                # (M, DIM)

    # Single large QKV projection (no bias) on the MXU: (M, DIM) @ (DIM, 3*INNER)
    qkv = jnp.dot(x2d, wqkv_ref[...],
                  preferred_element_type=jnp.float32)        # (M, 3*INNER)
    qkv3 = qkv.reshape(bp_blk, n, 3 * INNER)                 # (bp, N, 3*INNER)

    # Per-head scaled dot-product attention, batched over the slab axis.
    head_outs = []
    for h in range(HEADS):
        q = qkv3[:, :, 0 * INNER + h * DIM_HEAD: 0 * INNER + (h + 1) * DIM_HEAD]
        k = qkv3[:, :, 1 * INNER + h * DIM_HEAD: 1 * INNER + (h + 1) * DIM_HEAD]
        v = qkv3[:, :, 2 * INNER + h * DIM_HEAD: 2 * INNER + (h + 1) * DIM_HEAD]

        # Contract the last dims directly (no explicit transpose of k).
        dots = jnp.einsum('bnd,bmd->bnm', q, k,
                          preferred_element_type=jnp.float32) * SCALE   # (bp, N, N)
        m = jnp.max(dots, axis=-1, keepdims=True)
        e = jnp.exp(dots - m)
        denom = jnp.sum(e, axis=-1, keepdims=True)
        attn = e * pl.reciprocal(denom, approx=True)         # EUP vrcp
        head_outs.append(jnp.einsum('bnm,bmd->bnd', attn, v,
                                    preferred_element_type=jnp.float32))  # (bp, N, d)

    out = jnp.concatenate(head_outs, axis=-1)                # (bp, N, INNER) == 'b p n (h d)'
    out2d = out.reshape(bp_blk * n, INNER)                   # (M, INNER)

    # Output projection (to_out Linear; Dropout(p=0.0) is identity).
    y = jnp.dot(out2d, wout_ref[...],
                preferred_element_type=jnp.float32)          # (M, DIM)
    o_ref[...] = y.reshape(bp_blk, n, dim).astype(o_ref.dtype)


def mobilevit_attention(x, w_qkv, w_out):
    """x: (B, P, N, DIM) float32.  Returns (B, P, N, DIM)."""
    bsz, p, n, dim = x.shape
    bp = bsz * p
    x2 = x.reshape(bp, n, dim)

    # Two "parallel" grid steps when possible: on v7x each TensorCore gets half
    # the slabs; on v5e/v6e (single TC) the extra step is ~0.35us of overhead.
    n_blocks = 2 if (bp % 2 == 0 and bp >= 2) else 1
    bp_blk = bp // n_blocks

    out = pl.pallas_call(
        attention_kernel,
        out_shape=jax.ShapeDtypeStruct((bp, n, dim), x.dtype),
        grid_spec=pltpu.PrefetchScalarGridSpec(
            num_scalar_prefetch=0,
            grid=(n_blocks,),
            in_specs=[
                pl.BlockSpec((bp_blk, n, dim), lambda i: (i, 0, 0)),      # x slab group
                pl.BlockSpec((dim, 3 * INNER), lambda i: (0, 0)),         # w_qkv (resident)
                pl.BlockSpec((INNER, dim), lambda i: (0, 0)),             # w_out (resident)
            ],
            out_specs=pl.BlockSpec((bp_blk, n, dim), lambda i: (i, 0, 0)),
        ),
        compiler_params=pltpu.CompilerParams(
            dimension_semantics=("parallel",)),
    )(x2, w_qkv, w_out)

    return out.reshape(bsz, p, n, dim)


def reference_attention(x, w_qkv, w_out):
    """Plain-JAX reference mirroring the PyTorch forward."""
    qkv = jnp.einsum('bpnd,de->bpne', x, w_qkv)
    q, k, v = jnp.split(qkv, 3, axis=-1)

    def split_heads(t):  # 'b p n (h d) -> b p h n d'
        b_, p_, n_, _ = t.shape
        return t.reshape(b_, p_, n_, HEADS, DIM_HEAD).transpose(0, 1, 3, 2, 4)

    q, k, v = map(split_heads, (q, k, v))
    dots = jnp.einsum('bphnd,bphmd->bphnm', q, k) * SCALE
    attn = jax.nn.softmax(dots, axis=-1)
    out = jnp.einsum('bphnm,bphmd->bphnd', attn, v)
    out = out.transpose(0, 1, 3, 2, 4).reshape(x.shape[0], x.shape[1], x.shape[2], INNER)
    return jnp.einsum('bpni,id->bpnd', out, w_out)


if __name__ == "__main__":
    key = jax.random.PRNGKey(0)
    kx, kq, ko = jax.random.split(key, 3)

    x = jax.random.normal(kx, (B, P, N, DIM), dtype=jnp.float32)
    # deterministic synthetic weights (nn.Linear shapes, stored transposed)
    w_qkv = 0.02 * jax.random.normal(kq, (DIM, 3 * INNER), dtype=jnp.float32)
    w_out = 0.02 * jax.random.normal(ko, (INNER, DIM), dtype=jnp.float32)

    y = mobilevit_attention(x, w_qkv, w_out)
    y = jax.block_until_ready(y)

    y_ref = reference_attention(x, w_qkv, w_out)
    assert y.shape == (B, P, N, DIM)
    # Tolerance relaxed slightly from 1e-4 because the softmax denominator uses
    # the EUP approximate reciprocal (pl.reciprocal(approx=True)).
    assert jnp.allclose(y, y_ref, atol=1e-3, rtol=1e-3), "mismatch vs reference"

    print("KERNEL_OK")
</pallas_src>

<mosaic_0001>
module attributes {stable_mosaic.version = 11 : i64} {
  func.func @attention_kernel(%arg0: i32, %arg1: memref<4x16x32xf32, #tpu.memory_space<vmem>>, %arg2: memref<32x96xf32, #tpu.memory_space<vmem>>, %arg3: memref<32x32xf32, #tpu.memory_space<vmem>>, %arg4: memref<4x16x32xf32, #tpu.memory_space<vmem>>) attributes {dimension_semantics = [#tpu.dimension_semantics<parallel>], iteration_bounds = array<i64: 2>, scalar_prefetch = 0 : i64, scratch_operands = 0 : i64, tpu.core_type = #tpu.core_type<tc>, window_params = [{transform_indices = @transform_0, window_bounds = array<i64: 4, 16, 32>}, {pipeline_mode = #tpu.pipeline_mode<synchronous>, transform_indices = @transform_1, window_bounds = array<i64: 32, 96>}, {pipeline_mode = #tpu.pipeline_mode<synchronous>, transform_indices = @transform_2, window_bounds = array<i64: 32, 32>}, {transform_indices = @transform_3, window_bounds = array<i64: 4, 16, 32>}]} {
    %c0 = arith.constant 0 : index
    %c0_0 = arith.constant 0 : index
    %c0_1 = arith.constant 0 : index
    %0 = vector.load %arg1[%c0, %c0_0, %c0_1] : memref<4x16x32xf32, #tpu.memory_space<vmem>>, vector<4x16x32xf32>
    %1 = vector.shape_cast %0 : vector<4x16x32xf32> to vector<64x32xf32>
    %c0_2 = arith.constant 0 : index
    %c0_3 = arith.constant 0 : index
    %2 = vector.load %arg2[%c0_2, %c0_3] : memref<32x96xf32, #tpu.memory_space<vmem>>, vector<32x96xf32>
    %cst = arith.constant dense<0.000000e+00> : vector<64x96xf32>
    %3 = tpu.matmul %1, %2, %cst {dimension_numbers = #tpu.dot_dimension_numbers<[1], [0], [0], [1], [0, 0, 1, 1], [], []>} : vector<64x32xf32>, vector<32x96xf32>, vector<64x96xf32> -> vector<64x96xf32>
    %4 = vector.shape_cast %3 : vector<64x96xf32> to vector<4x16x96xf32>
    %5 = vector.extract_strided_slice %4 {offsets = [0, 0, 0], sizes = [4, 16, 8], strides = [1, 1, 1]} : vector<4x16x96xf32> to vector<4x16x8xf32>
    %6 = vector.extract_strided_slice %4 {offsets = [0, 0, 32], sizes = [4, 16, 8], strides = [1, 1, 1]} : vector<4x16x96xf32> to vector<4x16x8xf32>
    %7 = vector.extract_strided_slice %4 {offsets = [0, 0, 64], sizes = [4, 16, 8], strides = [1, 1, 1]} : vector<4x16x96xf32> to vector<4x16x8xf32>
    "tpu.trace_start"() <{level = 10 : i32, message = "bnd,bmd->bnm"}> : () -> ()
    %cst_4 = arith.constant dense<0.000000e+00> : vector<4x16x16xf32>
    %8 = tpu.matmul %5, %6, %cst_4 {dimension_numbers = #tpu.dot_dimension_numbers<[2], [2], [1], [1], [0, 0, 0, 1, 1, 1], [0], [0]>} : vector<4x16x8xf32>, vector<4x16x8xf32>, vector<4x16x16xf32> -> vector<4x16x16xf32>
    "tpu.trace_stop"() : () -> ()
    %cst_5 = arith.constant 0.353553385 : f32
    %9 = vector.broadcast %cst_5 : f32 to vector<4x16x16xf32>
    %10 = arith.mulf %8, %9 : vector<4x16x16xf32>
    %cst_6 = arith.constant dense<0xFF800000> : vector<4x16xf32>
    %11 = vector.multi_reduction <maximumf>, %10, %cst_6 [2] : vector<4x16x16xf32> to vector<4x16xf32>
    %12 = vector.shape_cast %11 : vector<4x16xf32> to vector<4x16x1xf32>
    %13 = vector.broadcast %12 : vector<4x16x1xf32> to vector<4x16x16xf32>
    %14 = arith.subf %10, %13 : vector<4x16x16xf32>
    %15 = math.exp %14 : vector<4x16x16xf32>
    %cst_7 = arith.constant dense<0.000000e+00> : vector<4x16xf32>
    %16 = vector.multi_reduction <add>, %15, %cst_7 [2] : vector<4x16x16xf32> to vector<4x16xf32>
    %17 = vector.shape_cast %16 : vector<4x16xf32> to vector<4x16x1xf32>
    %18 = tpu.reciprocal %17 {approx = true} : vector<4x16x1xf32> -> vector<4x16x1xf32>
    %19 = vector.broadcast %18 : vector<4x16x1xf32> to vector<4x16x16xf32>
    %20 = arith.mulf %15, %19 : vector<4x16x16xf32>
    "tpu.trace_start"() <{level = 10 : i32, message = "bnm,bmd->bnd"}> : () -> ()
    %cst_8 = arith.constant dense<0.000000e+00> : vector<4x16x8xf32>
    %21 = tpu.matmul %20, %7, %cst_8 {dimension_numbers = #tpu.dot_dimension_numbers<[2], [1], [1], [2], [0, 0, 0, 1, 1, 2], [0], [0]>} : vector<4x16x16xf32>, vector<4x16x8xf32>, vector<4x16x8xf32> -> vector<4x16x8xf32>
    "tpu.trace_stop"() : () -> ()
    %22 = vector.extract_strided_slice %4 {offsets = [0, 0, 8], sizes = [4, 16, 8], strides = [1, 1, 1]} : vector<4x16x96xf32> to vector<4x16x8xf32>
    %23 = vector.extract_strided_slice %4 {offsets = [0, 0, 40], sizes = [4, 16, 8], strides = [1, 1, 1]} : vector<4x16x96xf32> to vector<4x16x8xf32>
    %24 = vector.extract_strided_slice %4 {offsets = [0, 0, 72], sizes = [4, 16, 8], strides = [1, 1, 1]} : vector<4x16x96xf32> to vector<4x16x8xf32>
    "tpu.trace_start"() <{level = 10 : i32, message = "bnd,bmd->bnm"}> : () -> ()
    %cst_9 = arith.constant dense<0.000000e+00> : vector<4x16x16xf32>
    %25 = tpu.matmul %22, %23, %cst_9 {dimension_numbers = #tpu.dot_dimension_numbers<[2], [2], [1], [1], [0, 0, 0, 1, 1, 1], [0], [0]>} : vector<4x16x8xf32>, vector<4x16x8xf32>, vector<4x16x16xf32> -> vector<4x16x16xf32>
    "tpu.trace_stop"() : () -> ()
    %cst_10 = arith.constant 0.353553385 : f32
    %26 = vector.broadcast %cst_10 : f32 to vector<4x16x16xf32>
    %27 = arith.mulf %25, %26 : vector<4x16x16xf32>
    %cst_11 = arith.constant dense<0xFF800000> : vector<4x16xf32>
    %28 = vector.multi_reduction <maximumf>, %27, %cst_11 [2] : vector<4x16x16xf32> to vector<4x16xf32>
    %29 = vector.shape_cast %28 : vector<4x16xf32> to vector<4x16x1xf32>
    %30 = vector.broadcast %29 : vector<4x16x1xf32> to vector<4x16x16xf32>
    %31 = arith.subf %27, %30 : vector<4x16x16xf32>
    %32 = math.exp %31 : vector<4x16x16xf32>
    %cst_12 = arith.constant dense<0.000000e+00> : vector<4x16xf32>
    %33 = vector.multi_reduction <add>, %32, %cst_12 [2] : vector<4x16x16xf32> to vector<4x16xf32>
    %34 = vector.shape_cast %33 : vector<4x16xf32> to vector<4x16x1xf32>
    %35 = tpu.reciprocal %34 {approx = true} : vector<4x16x1xf32> -> vector<4x16x1xf32>
    %36 = vector.broadcast %35 : vector<4x16x1xf32> to vector<4x16x16xf32>
    %37 = arith.mulf %32, %36 : vector<4x16x16xf32>
    "tpu.trace_start"() <{level = 10 : i32, message = "bnm,bmd->bnd"}> : () -> ()
    %cst_13 = arith.constant dense<0.000000e+00> : vector<4x16x8xf32>
    %38 = tpu.matmul %37, %24, %cst_13 {dimension_numbers = #tpu.dot_dimension_numbers<[2], [1], [1], [2], [0, 0, 0, 1, 1, 2], [0], [0]>} : vector<4x16x16xf32>, vector<4x16x8xf32>, vector<4x16x8xf32> -> vector<4x16x8xf32>
    "tpu.trace_stop"() : () -> ()
    %39 = vector.extract_strided_slice %4 {offsets = [0, 0, 16], sizes = [4, 16, 8], strides = [1, 1, 1]} : vector<4x16x96xf32> to vector<4x16x8xf32>
    %40 = vector.extract_strided_slice %4 {offsets = [0, 0, 48], sizes = [4, 16, 8], strides = [1, 1, 1]} : vector<4x16x96xf32> to vector<4x16x8xf32>
    %41 = vector.extract_strided_slice %4 {offsets = [0, 0, 80], sizes = [4, 16, 8], strides = [1, 1, 1]} : vector<4x16x96xf32> to vector<4x16x8xf32>
    "tpu.trace_start"() <{level = 10 : i32, message = "bnd,bmd->bnm"}> : () -> ()
    %cst_14 = arith.constant dense<0.000000e+00> : vector<4x16x16xf32>
    %42 = tpu.matmul %39, %40, %cst_14 {dimension_numbers = #tpu.dot_dimension_numbers<[2], [2], [1], [1], [0, 0, 0, 1, 1, 1], [0], [0]>} : vector<4x16x8xf32>, vector<4x16x8xf32>, vector<4x16x16xf32> -> vector<4x16x16xf32>
    "tpu.trace_stop"() : () -> ()
    %cst_15 = arith.constant 0.353553385 : f32
    %43 = vector.broadcast %cst_15 : f32 to vector<4x16x16xf32>
    %44 = arith.mulf %42, %43 : vector<4x16x16xf32>
    %cst_16 = arith.constant dense<0xFF800000> : vector<4x16xf32>
    %45 = vector.multi_reduction <maximumf>, %44, %cst_16 [2] : vector<4x16x16xf32> to vector<4x16xf32>
    %46 = vector.shape_cast %45 : vector<4x16xf32> to vector<4x16x1xf32>
    %47 = vector.broadcast %46 : vector<4x16x1xf32> to vector<4x16x16xf32>
    %48 = arith.subf %44, %47 : vector<4x16x16xf32>
    %49 = math.exp %48 : vector<4x16x16xf32>
    %cst_17 = arith.constant dense<0.000000e+00> : vector<4x16xf32>
    %50 = vector.multi_reduction <add>, %49, %cst_17 [2] : vector<4x16x16xf32> to vector<4x16xf32>
    %51 = vector.shape_cast %50 : vector<4x16xf32> to vector<4x16x1xf32>
    %52 = tpu.reciprocal %51 {approx = true} : vector<4x16x1xf32> -> vector<4x16x1xf32>
    %53 = vector.broadcast %52 : vector<4x16x1xf32> to vector<4x16x16xf32>
    %54 = arith.mulf %49, %53 : vector<4x16x16xf32>
    "tpu.trace_start"() <{level = 10 : i32, message = "bnm,bmd->bnd"}> : () -> ()
    %cst_18 = arith.constant dense<0.000000e+00> : vector<4x16x8xf32>
    %55 = tpu.matmul %54, %41, %cst_18 {dimension_numbers = #tpu.dot_dimension_numbers<[2], [1], [1], [2], [0, 0, 0, 1, 1, 2], [0], [0]>} : vector<4x16x16xf32>, vector<4x16x8xf32>, vector<4x16x8xf32> -> vector<4x16x8xf32>
    "tpu.trace_stop"() : () -> ()
    %56 = vector.extract_strided_slice %4 {offsets = [0, 0, 24], sizes = [4, 16, 8], strides = [1, 1, 1]} : vector<4x16x96xf32> to vector<4x16x8xf32>
    %57 = vector.extract_strided_slice %4 {offsets = [0, 0, 56], sizes = [4, 16, 8], strides = [1, 1, 1]} : vector<4x16x96xf32> to vector<4x16x8xf32>
    %58 = vector.extract_strided_slice %4 {offsets = [0, 0, 88], sizes = [4, 16, 8], strides = [1, 1, 1]} : vector<4x16x96xf32> to vector<4x16x8xf32>
    "tpu.trace_start"() <{level = 10 : i32, message = "bnd,bmd->bnm"}> : () -> ()
    %cst_19 = arith.constant dense<0.000000e+00> : vector<4x16x16xf32>
    %59 = tpu.matmul %56, %57, %cst_19 {dimension_numbers = #tpu.dot_dimension_numbers<[2], [2], [1], [1], [0, 0, 0, 1, 1, 1], [0], [0]>} : vector<4x16x8xf32>, vector<4x16x8xf32>, vector<4x16x16xf32> -> vector<4x16x16xf32>
    "tpu.trace_stop"() : () -> ()
    %cst_20 = arith.constant 0.353553385 : f32
    %60 = vector.broadcast %cst_20 : f32 to vector<4x16x16xf32>
    %61 = arith.mulf %59, %60 : vector<4x16x16xf32>
    %cst_21 = arith.constant dense<0xFF800000> : vector<4x16xf32>
    %62 = vector.multi_reduction <maximumf>, %61, %cst_21 [2] : vector<4x16x16xf32> to vector<4x16xf32>
    %63 = vector.shape_cast %62 : vector<4x16xf32> to vector<4x16x1xf32>
    %64 = vector.broadcast %63 : vector<4x16x1xf32> to vector<4x16x16xf32>
    %65 = arith.subf %61, %64 : vector<4x16x16xf32>
    %66 = math.exp %65 : vector<4x16x16xf32>
    %cst_22 = arith.constant dense<0.000000e+00> : vector<4x16xf32>
    %67 = vector.multi_reduction <add>, %66, %cst_22 [2] : vector<4x16x16xf32> to vector<4x16xf32>
    %68 = vector.shape_cast %67 : vector<4x16xf32> to vector<4x16x1xf32>
    %69 = tpu.reciprocal %68 {approx = true} : vector<4x16x1xf32> -> vector<4x16x1xf32>
    %70 = vector.broadcast %69 : vector<4x16x1xf32> to vector<4x16x16xf32>
    %71 = arith.mulf %66, %70 : vector<4x16x16xf32>
    "tpu.trace_start"() <{level = 10 : i32, message = "bnm,bmd->bnd"}> : () -> ()
    %cst_23 = arith.constant dense<0.000000e+00> : vector<4x16x8xf32>
    %72 = tpu.matmul %71, %58, %cst_23 {dimension_numbers = #tpu.dot_dimension_numbers<[2], [1], [1], [2], [0, 0, 0, 1, 1, 2], [0], [0]>} : vector<4x16x16xf32>, vector<4x16x8xf32>, vector<4x16x8xf32> -> vector<4x16x8xf32>
    "tpu.trace_stop"() : () -> ()
    %73 = tpu.concatenate %21, %38, %55, %72 in 2 : vector<4x16x8xf32>, vector<4x16x8xf32>, vector<4x16x8xf32>, vector<4x16x8xf32> -> vector<4x16x32xf32>
    %74 = vector.shape_cast %73 : vector<4x16x32xf32> to vector<64x32xf32>
    %c0_24 = arith.constant 0 : index
    %c0_25 = arith.constant 0 : index
    %75 = vector.load %arg3[%c0_24, %c0_25] : memref<32x32xf32, #tpu.memory_space<vmem>>, vector<32x32xf32>
    %cst_26 = arith.constant dense<0.000000e+00> : vector<64x32xf32>
    %76 = tpu.matmul %74, %75, %cst_26 {dimension_numbers = #tpu.dot_dimension_numbers<[1], [0], [0], [1], [0, 0, 1, 1], [], []>} : vector<64x32xf32>, vector<32x32xf32>, vector<64x32xf32> -> vector<64x32xf32>
    %77 = vector.shape_cast %76 : vector<64x32xf32> to vector<4x16x32xf32>
    %c0_27 = arith.constant 0 : index
    %c0_28 = arith.constant 0 : index
    %c0_29 = arith.constant 0 : index
    %78 = vector.load %arg4[%c0_27, %c0_28, %c0_29] : memref<4x16x32xf32, #tpu.memory_space<vmem>>, vector<4x16x32xf32>
    tpu.vector_store %arg4[%c0_27, %c0_28, %c0_29], %77 {strides = array<i32>} : memref<4x16x32xf32, #tpu.memory_space<vmem>>, vector<4x16x32xf32>,
    return
  }
  func.func @transform_0(%arg0: i32) -> (i32, i32, i32) {
    %c0_i32 = arith.constant 0 : i32
    %c0_i32_0 = arith.constant 0 : i32
    %c0_i32_1 = arith.constant 0 : i32
    return %arg0, %c0_i32, %c0_i32_0 : i32, i32, i32
  }
  func.func @transform_1(%arg0: i32) -> (i32, i32) {
    %c0_i32 = arith.constant 0 : i32
    %c0_i32_0 = arith.constant 0 : i32
    %c0_i32_1 = arith.constant 0 : i32
    return %c0_i32, %c0_i32_0 : i32, i32
  }
  func.func @transform_2(%arg0: i32) -> (i32, i32) {
    %c0_i32 = arith.constant 0 : i32
    %c0_i32_0 = arith.constant 0 : i32
    %c0_i32_1 = arith.constant 0 : i32
    return %c0_i32, %c0_i32_0 : i32, i32
  }
  func.func @transform_3(%arg0: i32) -> (i32, i32, i32) {
    %c0_i32 = arith.constant 0 : i32
    %c0_i32_0 = arith.constant 0 : i32
    %c0_i32_1 = arith.constant 0 : i32
    return %arg0, %c0_i32, %c0_i32_0 : i32, i32, i32
  }
}

</mosaic_0001>

<bundles_post_ra>
// kernel: tpu_custom_call.1
= control target key start
LH: loop header
LB: loop body
LE: loop exit
PB: predicated region body
PF: predicated region fallthrough
CT: control target
= control target key end

     0   :  { %8 = vsyncpa [#allocation3], 0  ;;  %s5873_s0 = inlined_call_operand.hbm [shape: f32[8,16,32], index: 0, kind: input, shape index: {}]   ;;  %s5874_s1 = inlined_call_operand.hbm [shape: f32[32,96], index: 1, kind: input, shape index: {}]   ;;  %s5875_s2 = inlined_call_operand.hbm [shape: f32[32,32], index: 2, kind: input, shape index: {}]   ;;  %s5876_s3 = inlined_call_operand.hbm [shape: f32[8,16,32], index: 3, kind: output, shape index: {}]  }
   0x1   :  { %10 = vsyncpa [#allocation3 + $0x1], 0 }
   0x2   :  { %11 = vsyncpa [#allocation6], 0 }
   0x3   :  { %12 = vsyncpa [#allocation4], 0 }
   0x4   :  { %14 = vsyncpa [#allocation4 + $0x1], 0  ;;  %s4921_s12 = smov 0   ;;  %s4923_s13 = smov 0  }
   0x5   :  { %s4925_s14 = smov 0   ;;  %s4927_s15 = smov 0  }
   0x6 LB: > { %s4942_s16 = sadd.s32 4294967295, %s4878_s15   ;;  %s3958_s17 = sadd.s32 4294967294, %s4878_s15   ;;  %s4878_s15 = sphi %s4927_s15, %s5897_s15   ;;  %s4874_s14 = sphi %s4925_s14, %s5896_s14   ;;  %s4870_s13 = sphi %s4923_s13, %s5895_s13   ;;  %s4866_s12 = sphi %s4921_s12, %s5894_s12  }
   0x7   : > { %p40_p0 = scmp.ne.s32.totalorder %s4870_s13, %s4866_s12  ;;  %p5877_p1 = scmp.eq.s32.totalorder %s4942_s16, 0 }
   0x8   : > { %p106_p2 = scmp.eq.s32.totalorder %s4942_s16, 1  ;;  %p112_p3 = scmp.eq.s32.totalorder %s3958_s17, 1 }
   0x9   : > { %p4951_p4 = por %p5877_p1, %p40_p0  ;;  %p3959_p5 = scmp.ge.s32.totalorder %s4878_s15, 1 }
   0xa   : > { %p4956_p6 = por %p112_p3, %p40_p0  ;;  %p119_p7 = scmp.lt.s32.totalorder %s4878_s15, 3 }
   0xb   : > { %s5881_s18 = scalar_select %p4951_p4, 1, 0 }
   0xc   : > { %s5882_s19 = scalar_select %p4956_p6, 1, 0 }
   0xd   : > { %p4961_p8 = pnand %p3959_p5, %p119_p7  ;;  %s4880_s21 = smov [#allocation5]  }
   0xe   : > { %s131_s22 = sshll.u32 %s4880_s21, 4  ;;  %s4881_s24 = smov [#allocation7]   ;;  %s132_s22 = int_to_ptr.vmem [resolvable:$true] %s131_s22 }
   0xf   : > { %s5883_s20 = scalar_select %p4961_p8, 1, 0 }
  0x10   : > { %p4530_p9 = pneg %p4961_p8  ;;  %s144_s25 = sshll.u32 %s4881_s24, 4  ;;  %s145_s25 = int_to_ptr.vmem [resolvable:$true] %s144_s25 }
  0x11   : > { %s4741_s26 = scalar_lea.vmem %s132_s22, 512  ;;  %p4749_p5 = scmp.lt.s32.totalorder %s132_s22, %s132_s22 }
  0x12   : > { %p4970_p11 = pnand %p4530_p9, %p5877_p1  ;;  %p4742_p13 = scmp.ne.s32.totalorder %s132_s22, %s4741_s26 }
  0x13   : > { %p4750_p7 = scmp.lt.s32.totalorder %s4741_s26, %s4741_s26 }
  0x14   : > { %p4732_p12 = pneg %p4970_p11 }
  0x15   : > { %p4751_p10 = por %p4750_p7, %p4749_p5 }
  0x16   : > { %p4744_p0 = pnand %p4742_p13, %p4732_p12 }
  0x18   : > { %p4745_p3 = pneg %p4744_p0 }
  0x1a   : > { %p4752_p9 = pnand %p4751_p10, %p4745_p3 }
  0x1c   : > { %4755 = shalt.err (!%p4752_p9)
}
  0x1d   : > { %s4882_s27 = smov 128   ;;  %s4883_s28 = smov 8  }
  0x1e   : > { %4533 = dma.hbm_to_vmem [thread:$0]  (!%p4970_p11), %s5874_s1, 512, %s132_s22, [#allocation6], %s4882_s27, %s4882_s27, %s4883_s28  }
  0x1f   : > { %s4767_s4 = scalar_lea.vmem %s145_s25, 512  ;;  %p4775_p10 = scmp.lt.s32.totalorder %s145_s25, %s145_s25 }
  0x20   : > { %p4768_p13 = scmp.ne.s32.totalorder %s145_s25, %s4767_s4  ;;  %p4776_p3 = scmp.lt.s32.totalorder %s4767_s4, %s4767_s4 }
  0x22   : > { %p4770_p0 = pnand %p4768_p13, %p4732_p12  ;;  %p4777_p7 = por %p4776_p3, %p4775_p10 }
  0x24   : > { %p4771_p5 = pneg %p4770_p0 }
  0x26   : > { %p4778_p9 = pnand %p4777_p7, %p4771_p5 }
  0x28   : > { %4781 = shalt.err (!%p4778_p9)
}
  0x29   : > { %4536 = dma.hbm_to_vmem [thread:$0]  (!%p4970_p11), %s5875_s2, 512, %s145_s25, [#allocation6], %s4882_s27, %s4882_s27, %s4883_s28  }
  0x2a   : > { %s4999_s7 = sadd.s32 1, %s4878_s15   ;;  %s27_s8 = sadd.s32 1, %s4874_s14 }
  0x2b   : > { %s24_s9 = ssub.s32 %s4878_s15, %s4999_s7  ;;  %p34_p12 = scmp.ne.s32.totalorder %s4874_s14, %s4870_s13 }
  0x2c   : > { %p25_p13 = scmp.eq.s32.totalorder %s24_s9, 0  ;;  %p35_p0 = scmp.eq.s32.totalorder %s4878_s15, 0 }
  0x2d   : > { %p5009_p5 = por %p106_p2, %p34_p12  ;;  %p4547_p10 = scmp.lt.s32.totalorder %s4878_s15, 2 }
  0x2e   : > { %s5015_s11 = scalar_select %p25_p13, %s4874_s14, %s27_s8  }
  0x2f   : > { %s5885_s10 = scalar_select %p5009_p5, 1, 0 }
  0x30   : > { %p36_p3 = por %p35_p0, %p34_p12  ;;  %s158_s17 = sand.u32 1, %s4874_s14  }
  0x31   : > { %s3963_s21 = sshll.u32 %s158_s17, 6  ;;  %s4091_s22 = sshll.u32 %s4878_s15, 10 }
  0x32   : > { %s5022_s25 = scalar_lea.hbm %s5873_s0, %s4091_s22  ;;  %s162_s26 = scalar_lea.vmem [#allocation2], %s3963_s21 }
  0x33   : > { %s170_s29 = sshll.u32 %s162_s26, 4  ;;  %p5026_p2 = pnand %p4547_p10, %p36_p3  ;;  %s5024_s29 = int_to_ptr.vmem [resolvable:$true] %s170_s29 }
  0x34   : > { %s5030_s4 = scalar_lea.sflag [#allocation3], %s158_s17  ;;  %s4782_s5 = scalar_lea.hbm %s5022_s25, 1024 }
  0x35   : > { %p4783_p11 = scmp.ne.s32.totalorder %s5022_s25, %s4782_s5  ;;  %p4784_p7 = pneg %p5026_p2 }
  0x36   : > { %s4787_s9 = scalar_lea.hbm %s5873_s0, 2048  ;;  %p4788_p13 = scmp.lt.s32.totalorder %s5022_s25, %s5873_s0 }
  0x37   : > { %p4785_p9 = pnand %p4784_p7, %p4783_p11  ;;  %p4789_p0 = scmp.lt.s32.totalorder %s4787_s9, %s4782_s5 }
  0x39   : > { %p4786_p12 = pneg %p4785_p9  ;;  %p4790_p10 = por %p4789_p0, %p4788_p13 }
  0x3b   : > { %p4791_p3 = pnand %p4790_p10, %p4786_p12 }
  0x3d   : > { %4794 = shalt.err (!%p4791_p3)
}
  0x3e   : > { %s4795_s17 = scalar_lea.vmem %s5024_s29, 1024  ;;  %s4884_s23 = smov [#allocation2]  }
  0x3f   : > { %p4796_p1 = scmp.ne.s32.totalorder %s5024_s29, %s4795_s17  ;;  %s4800_s24 = sshll.u32 %s4884_s23, 4  ;;  %s4801_s24 = int_to_ptr.vmem [resolvable:$false] %s4800_s24 }
  0x40   : > { %s4802_s26 = scalar_lea.vmem %s4801_s24, 2048  ;;  %p4803_p9 = scmp.lt.s32.totalorder %s5024_s29, %s4801_s24 }
  0x41   : > { %p4798_p6 = pnand %p4796_p1, %p4784_p7  ;;  %p4804_p5 = scmp.lt.s32.totalorder %s4802_s26, %s4795_s17 }
  0x43   : > { %p4799_p11 = pneg %p4798_p6  ;;  %p4805_p4 = por %p4804_p5, %p4803_p9 }
  0x45   : > { %p4806_p8 = pnand %p4805_p4, %p4799_p11 }
  0x47   : > { %4809 = shalt.err (!%p4806_p8)
}
  0x48   : > { %4540 = dma.hbm_to_vmem [thread:$0]  (!%p5026_p2), %s5022_s25, 1024, %s5024_s29, %s5030_s4, %s4882_s27, %s4882_s27, %s4883_s28  }
  0x49   : > { %p5887_p1 = scmp.ne.s32.totalorder %s5883_s20, 0 }
  0x4a   : > { %s5057_s5 = sand.u32 (!%p5887_p1), 1, %s4870_s13   ;;  %p5888_p4 = scmp.ne.s32.totalorder (!%p5887_p1), %s5881_s18, 0 }
  0x4b   : > { %182 = sbr.rel (%p5887_p1) target bundleno = 3246 (0xcae), region = 32  ;;  %s3968_s6 = sshll.u32 (!%p5887_p1), %s5057_s5, 6 }
  0x4c   : > { %s185_s8 = scalar_lea.sflag (!%p5887_p1), [#allocation3], %s5057_s5  ;;  %s5063_s30 = scalar_lea.vmem (!%p5887_p1), [#allocation2], %s3968_s6 }
  0x50   : > { %4853 = dma.done.wait (%p5888_p4), %s185_s8, 1024  }
  0x51   : > { %4855 = vsyncadd (%p5888_p4), %s185_s8, 4294966272  ;;  %p5889_p6 = scmp.eq.s32.totalorder %s4942_s16, 0 }
  0x53   : > { %4857 = dma.done.wait (%p5889_p6), [#allocation6], 1024   ;;  %p5890_p8 = pmov %p5889_p6 }
  0x54   : > { %vm233_vm0 = vcmask 261120   ;;  %v232_v0 = vld [vmem:[#allocation5 + $0x18] sm:$0xff]  ;;  %v231_v1 = vld [vmem:[#allocation5 + $0x10] sm:$0xff]  ;;  %v221_v2 = vld [vmem:[%s5063_s30] sm:$0xff]  ;;  %vm369_vm1 = vcmask 64512   ;;  %s4885_s18 = smov 96  }
  0x55   : > { %4859 = vsyncadd (%p5890_p8), [#allocation6], 4294966272  ;;  %4246 = vmatprep.subr.mxu0 %v232_v0  ;;  %4510 = vmatprep.subr.mxu1 %v232_v0  ;;  %v230_v3 = vld [vmem:[#allocation5 + $0x8] sm:$0xff]  ;;  %v229_v4 = vld [vmem:[#allocation5] sm:$0xff]  ;;  %s4886_s20 = smov 64   ;;  %vm728_vm2 = vcmask 130048  }
  0x56   : > { %4247 = vmatpush3.msra.mxu0 %v232_v0  ;;  %4254 = vmatprep.mubr.msk.f32.mxu0 %vm233_vm0, %v221_v2  ;;  %v222_v5 = vld [vmem:[%s5063_s30 + $0x8] sm:$0xff]  ;;  %v223_v6 = vld [vmem:[%s5063_s30 + $0x10] sm:$0xff]  ;;  %v225_v7 = vld [vmem:[%s5063_s30 + $0x20] sm:$0xff]  ;;  %s4887_s27 = smov 88   ;;  %s4888_s28 = smov 120   ;;  %vm3701_vm3 = vcmask 195584  }
  0x57   : > { %4248 = vmatprep.subr.mxu0 %v231_v1  ;;  %4514 = vmatpush3.msra.mxu1 %v232_v0  ;;  %v226_v8 = vld [vmem:[%s5063_s30 + $0x28] sm:$0xff]  ;;  %v227_v9 = vld [vmem:[%s5063_s30 + $0x30] sm:$0xff]  ;;  %v224_v10 = vld [vmem:[%s5063_s30 + $0x18] sm:$0xff]  ;;  %s4889_s25 = smov 56   ;;  %s4890_s29 = smov 80  }
  0x58   : > { %4249 = vmatpush3.msra.mxu0 %v231_v1  ;;  %4511 = vmatprep.subr.mxu1 %v231_v1  ;;  %v228_v11 = vld [vmem:[%s5063_s30 + $0x38] sm:$0xff]  ;;  %s4891_s4 = smov 112   ;;  %s4892_s9 = smov 48  }
  0x59   : > { %4250 = vmatprep.subr.mxu0 %v230_v3  ;;  %4515 = vmatpush3.msra.mxu1 %v231_v1  ;;  %s4893_s21 = smov 72   ;;  %s4894_s22 = smov 104  }
  0x5a   : > { %4251 = vmatpush3.msra.mxu0 %v230_v3  ;;  %4512 = vmatprep.subr.mxu1 %v230_v3  ;;  %s4895_s17 = smov 40   ;;  %s4896_s23 = smov 8  }
  0x5b   : > { %4252 = vmatprep.subr.mxu0 %v229_v4  ;;  %4516 = vmatpush3.msra.mxu1 %v230_v3  ;;  %s4897_s24 = smov 16   ;;  %s4898_s26 = smov 24  }
  0x5c   : > { %4253 = vmatpush3.msra.mxu0 %v229_v4  ;;  %4513 = vmatprep.subr.mxu1 %v229_v4  ;;  %s218_s8 = scalar_lea.vmem [#allocation8], %s3968_s6  ;;  %p5891_p2 = scmp.ne.s32.totalorder %s5885_s10, 0 }
  0x5d   : > { %4255 = vmatmul.mubr.msk.f32.vlgmr.msra.gmra.mxu0 %vm233_vm0, %v222_v5  ;;  %4517 = vmatpush3.msra.mxu1 %v229_v4  ;;  %s3866_s30 = sshll.u32 %s218_s8, 4  ;;  %s5822_s30 = int_to_ptr.vmem [resolvable:$true] %s3866_s30 }
  0x5e   : > { %4257 = vmatprep.mubr.msk.f32.mxu0 %vm233_vm0, %v223_v6  ;;  %4260 = vmatprep.mubr.msk.f32.mxu1 %vm233_vm0, %v225_v7 }
  0x5f   : > { %4261 = vmatmul.mubr.msk.f32.vlgmr.msra.gmra.mxu1 %vm233_vm0, %v226_v8 }
  0x60   : > { %4263 = vmatprep.mubr.msk.f32.mxu1 %vm233_vm0, %v227_v9 }
  0x61   : > { %4258 = vmatmul.mubr.msk.f32.gmra.mxu0 %vm233_vm0, %v224_v10 }
  0x63   : > { %4264 = vmatmul.mubr.msk.f32.gmra.mxu1 %vm233_vm0, %v228_v11 }
 0x11d   : > { %v5089_v12 = vpop.f32.mrf.mxu0 }
 0x11e   : > { %367 = vrot.lane.b32.xlu0 %v5089_v12, %s4885_s18 }
 0x11f   : > { %v5092_v13 = vpop.f32.mrf.mxu0  ;;  %v5096_v14 = vpop.f32.mrf.mxu1 }
 0x120   : > { %4270 = vmatprep.mubr.msk.f32.mxu1 %vm369_vm1, %v5092_v13 }
 0x121   : > { %v5098_v15 = vpop.f32.mrf.mxu0  ;;  %v5102_v16 = vpop.f32.mrf.mxu1 }
 0x122   : > { %365 = vrot.lane.b32.xlu0 %v5092_v13, %s4885_s18  ;;  %457 = vrot.lane.b32.xlu1 %v5098_v15, %s4885_s18 }
 0x123   : > { %v5104_v17 = vpop.f32.mrf.mxu0  ;;  %4284 = vmatprep.mubr.msk.f32.mxu0 %vm369_vm1, %v5102_v16  ;;  %v5110_v18 = vpop.f32.mrf.mxu1 }
 0x125   : > { %v5114_v19 = vpop.f32.mrf.mxu1 }
 0x126   : > { %546 = vrot.lane.b32.xlu0 %v5096_v14, %s4885_s18  ;;  %455 = vrot.lane.b32.xlu1 %v5104_v17, %s4885_s18 }
 0x12a   : > { %544 = vrot.lane.b32.xlu1 %v5102_v16, %s4885_s18  ;;  %635 = vrot.lane.b32.xlu0 %v5110_v18, %s4885_s18 }
 0x12e   : > { %633 = vrot.lane.b32.xlu1 %v5114_v19, %s4885_s18  ;;  %s4093_s18 = sshll.u32 %s4942_s16, 10  ;;  %s4810_s16 = scalar_lea.vmem %s5822_s30, 1024 }
 0x12f   : > { %p4811_p5 = scmp.ne.s32.totalorder %s5822_s30, %s4810_s16 }
 0x131   : > { %p4812_p7 = pnand %p4811_p5, %p5891_p2 }
 0x132   : > { %819 = vrot.lane.b32.xlu1 %v5089_v12, %s4886_s20 }
 0x133   : > { %p4813_p12 = pneg %p4812_p7 }
 0x190   : > { %v368_v20 = vpop.permute.xlu0 %367 }
 0x191   : > { %4266 = vmatprep.subr.msk.mxu1 %vm369_vm1, %v368_v20 }
 0x192   : > { %4267 = vmatpush3.xpose.msk.msra.mxu1 %vm369_vm1, %v368_v20 }
 0x194   : > { %v366_v21 = vpop.permute.xlu0 %365  ;;  %v458_v22 = vpop.permute.xlu1 %457 }
 0x195   : > { %4268 = vmatprep.subr.msk.mxu1 %vm369_vm1, %v366_v21 }
 0x196   : > { %4269 = vmatpush3.xpose.msk.msra.mxu1 %vm369_vm1, %v366_v21 }
 0x197   : > { %4273 = vmatprep.subr.msk.mxu1 %vm369_vm1, %v458_v22 }
 0x198   : > { %v547_v23 = vpop.permute.xlu0 %546  ;;  %v456_v24 = vpop.permute.xlu1 %455 }
 0x199   : > { %4271 = vmatmul.mubr.msk.f32.vlgmr.msra.gmra.mxu1 %vm369_vm1, %v5089_v12  ;;  %4280 = vmatprep.subr.msk.mxu0 %vm369_vm1, %v547_v23 }
 0x19a   : > { %4274 = vmatpush3.xpose.msk.msra.mxu1 %vm369_vm1, %v458_v22  ;;  %4277 = vmatprep.mubr.msk.f32.mxu1 %vm369_vm1, %v5104_v17 }
 0x19b   : > { %4281 = vmatpush3.xpose.msk.msra.mxu0 %vm369_vm1, %v547_v23  ;;  %4275 = vmatprep.subr.msk.mxu1 %vm369_vm1, %v456_v24 }
 0x19c   : > { %v545_v25 = vpop.permute.xlu1 %544  ;;  %v636_v26 = vpop.permute.xlu0 %635 }
 0x19d   : > { %4282 = vmatprep.subr.msk.mxu0 %vm369_vm1, %v545_v25 }
 0x19e   : > { %4276 = vmatpush3.xpose.msk.msra.mxu1 %vm369_vm1, %v456_v24 }
 0x19f   : > { %4283 = vmatpush3.xpose.msk.msra.mxu0 %vm369_vm1, %v545_v25  ;;  %4287 = vmatprep.subr.msk.mxu1 %vm369_vm1, %v636_v26 }
 0x1a0   : > { %v634_v27 = vpop.permute.xlu1 %633 }
 0x1a1   : > { %4278 = vmatmul.mubr.msk.f32.vlgmr.msra.gmra.mxu1 %vm369_vm1, %v5098_v15 }
 0x1a2   : > { %4285 = vmatmul.mubr.msk.f32.vlgmr.msra.gmra.mxu0 %vm369_vm1, %v5096_v14  ;;  %4288 = vmatpush3.xpose.msk.msra.mxu1 %vm369_vm1, %v636_v26 }
 0x1a3   : > { %4291 = vmatprep.mubr.msk.f32.mxu1 %vm369_vm1, %v5114_v19  ;;  %4289 = vmatprep.subr.msk.mxu1 %vm369_vm1, %v634_v27 }
 0x1a4   : > { %v820_v28 = vpop.permute.xlu1 %819 }
 0x1a5   : > { %4294 = vmatprep.subr.mxu0 %v820_v28 }
 0x1a6   : > { %4290 = vmatpush3.xpose.msk.msra.mxu1 %vm369_vm1, %v634_v27  ;;  %4295 = vmatpush3.msra.mxu0 %v820_v28 }
 0x1a9   : > { %4292 = vmatmul.mubr.msk.f32.vlgmr.msra.gmra.mxu1 %vm369_vm1, %v5110_v18 }
 0x259   : > { %v4272_v29 = vpop.f32.mrf.mxu1 }
 0x25a   : > { %v721_v30 = vmul.f32 0.35355338, %v4272_v29 }
 0x25b   : > { %v444_v32 = vpop.f32.mrf.mxu1 }
 0x25c   : > { %v732_v31 = vsel %vm728_vm2, %v721_v30, -inf  ;;  %v720_v38 = vmul.f32 0.35355338, %v444_v32 }
 0x25d   : > { %733 = vmax.xlane.f32.xlu1 %v732_v31 }
 0x25e   : > { %v729_v42 = vsel %vm728_vm2, %v720_v38, -inf }
 0x261   : > { %v4279_v33 = vpop.f32.mrf.mxu1 }
 0x262   : > { %v723_v34 = vmul.f32 0.35355338, %v4279_v33  ;;  %v4286_v35 = vpop.f32.mrf.mxu0 }
 0x263   : > { %v725_v36 = vmul.f32 0.35355338, %v4286_v35  ;;  %v533_v43 = vpop.f32.mrf.mxu1 }
 0x264   : > { %v738_v37 = vsel %vm728_vm2, %v723_v34, -inf  ;;  %v622_v40 = vpop.f32.mrf.mxu0  ;;  %v722_v44 = vmul.f32 0.35355338, %v533_v43 }
 0x265   : > { %v744_v39 = vsel %vm728_vm2, %v725_v36, -inf  ;;  %739 = vmax.xlane.f32.xlu1 %v738_v37  ;;  %v724_v41 = vmul.f32 0.35355338, %v622_v40 }
 0x266   : > { %745 = vmax.xlane.f32.xlu0 %v744_v39  ;;  %v735_v48 = vsel %vm728_vm2, %v722_v44, -inf }
 0x267   : > { %v741_v45 = vsel %vm728_vm2, %v724_v41, -inf }
 0x269   : > { %v4293_v46 = vpop.f32.mrf.mxu1 }
 0x26a   : > { %730 = vmax.xlane.f32.xlu0 %v729_v42  ;;  %v727_v47 = vmul.f32 0.35355338, %v4293_v46 }
 0x26b   : > { %v711_v50 = vpop.f32.mrf.mxu1 }
 0x26c   : > { %v750_v49 = vsel %vm728_vm2, %v727_v47, -inf  ;;  %v5182_v51 = vmul.f32 0.35355338, %v711_v50 }
 0x26e   : > { %742 = vmax.xlane.f32.xlu0 %v741_v45  ;;  %v747_v52 = vsel %vm728_vm2, %v5182_v51, -inf }
 0x272   : > { %736 = vmax.xlane.f32.xlu0 %v735_v48 }
 0x276   : > { %751 = vmax.xlane.f32.xlu0 %v750_v49  ;;  %906 = vrot.lane.b32.xlu1 %v5098_v15, %s4886_s20 }
 0x27a   : > { %993 = vrot.lane.b32.xlu1 %v5096_v14, %s4886_s20 }
 0x27e   : > { %991 = vrot.lane.b32.xlu1 %v5102_v16, %s4886_s20 }
 0x282   : > { %1171 = vrot.lane.b32.xlu1 %v5089_v12, %s4887_s27 }
 0x286   : > { %1169 = vrot.lane.b32.xlu1 %v5092_v13, %s4887_s27 }
 0x28a   : > { %1165 = vrot.lane.b32.xlu1 %v5092_v13, %s4888_s28 }
 0x28c   : > { %817 = vrot.lane.b32.xlu0 %v5092_v13, %s4886_s20 }
 0x28e   : > { %1353 = vrot.lane.b32.xlu1 %v5096_v14, %s4887_s27 }
 0x290   : > { %904 = vrot.lane.b32.xlu0 %v5104_v17, %s4886_s20 }
 0x294   : > { %1080 = vrot.lane.b32.xlu0 %v5110_v18, %s4886_s20 }
 0x298   : > { %1078 = vrot.lane.b32.xlu0 %v5114_v19, %s4886_s20 }
 0x29c   : > { %1262 = vrot.lane.b32.xlu0 %v5098_v15, %s4887_s27 }
 0x2a0   : > { %1260 = vrot.lane.b32.xlu0 %v5104_v17, %s4887_s27 }
 0x2a4   : > { %1167 = vrot.lane.b32.xlu0 %v5089_v12, %s4888_s28 }
 0x2b2   : > { %748 = vmax.xlane.f32.xlu1 %v747_v52 }
 0x2c3   : > { %1256 = vrot.lane.b32.xlu1 %v5104_v17, %s4888_s28 }
 0x2e6   : > { %v734_v53 = vpop.xlane.xlu1 %733 }
 0x2e7   : > { %v754_v54 = vsub.f32 %v721_v30, %v734_v53 }
 0x2e9   : > { %v763_v55 = vmul.f32 1.442695, %v754_v54 }
 0x2eb   : > { %4602 = vpow2.f32 %v763_v55 }
 0x2ee   : > { %v740_v56 = vpop.xlane.xlu1 %739 }
 0x2ef   : > { %v746_v57 = vpop.xlane.xlu0 %745  ;;  %v756_v60 = vsub.f32 %v723_v34, %v740_v56 }
 0x2f0   : > { %v758_v58 = vsub.f32 %v725_v36, %v746_v57 }
 0x2f1   : > { %v767_v0 = vmul.f32 1.442695, %v756_v60 }
 0x2f2   : > { %v771_v59 = vmul.f32 1.442695, %v758_v58  ;;  %v907_v61 = vpop.permute.xlu1 %906 }
 0x2f3   : > { %v731_v62 = vpop.xlane.xlu0 %730  ;;  %4301 = vmatprep.subr.mxu1 %v907_v61 }
 0x2f4   : > { %4604 = vpow2.f32 %v771_v59  ;;  %v753_v63 = vsub.f32 %v720_v38, %v731_v62  ;;  %4302 = vmatpush3.msra.mxu1 %v907_v61 }
 0x2f6   : > { %v761_v1 = vmul.f32 1.442695, %v753_v63  ;;  %v5198_v25 = vpop.permute.xlu1 %993 }
 0x2f7   : > { %v743_v2 = vpop.xlane.xlu0 %742 }
 0x2f8   : > { %v5188_v3 = vpop.eup %4602  ;;  %4606 = vpow2.f32 %v761_v1  ;;  %v757_v4 = vsub.f32 %v724_v41, %v743_v2 }
 0x2f9   : > { %v780_v5 = vsel %vm728_vm2, %v5188_v3, 0.0  ;;  %4608 = vpow2.f32 %v767_v0 }
 0x2fa   : > { %v769_v6 = vmul.f32 1.442695, %v757_v4  ;;  %781 = vadd.xlane.f32.xlu0 %v780_v5  ;;  %v992_v37 = vpop.permute.xlu1 %991 }
 0x2fb   : > { %v737_v7 = vpop.xlane.xlu0 %736 }
 0x2fc   : > { %4610 = vpow2.f32 %v769_v6  ;;  %v755_v8 = vsub.f32 %v722_v44, %v737_v7 }
 0x2fe   : > { %v765_v9 = vmul.f32 1.442695, %v755_v8  ;;  %v1172_v38 = vpop.permute.xlu1 %1171 }
 0x2ff   : > { %v752_v10 = vpop.xlane.xlu0 %751 }
 0x300   : > { %4612 = vpow2.f32 %v765_v9  ;;  %v760_v11 = vsub.f32 %v727_v47, %v752_v10 }
 0x301   : > { %v5192_v20 = vpop.eup %4604 }
 0x302   : > { %v775_v21 = vmul.f32 1.442695, %v760_v11  ;;  %v792_v22 = vsel %vm728_vm2, %v5192_v20, 0.0  ;;  %v1170_v39 = vpop.permute.xlu1 %1169 }
 0x303   : > { %793 = vadd.xlane.f32.xlu0 %v792_v22  ;;  %v818_v23 = vpop.permute.xlu0 %817 }
 0x304   : > { %4614 = vpow2.f32 %v775_v21  ;;  %4296 = vmatprep.subr.mxu0 %v818_v23 }
 0x305   : > { %v5196_v24 = vpop.eup %4606  ;;  %4297 = vmatpush3.msra.mxu0 %v818_v23 }
 0x306   : > { %4308 = vmatprep.subr.mxu0 %v5198_v25  ;;  %v777_v26 = vsel %vm728_vm2, %v5196_v24, 0.0  ;;  %v5203_v27 = vpop.eup %4608  ;;  %v1166_v40 = vpop.permute.xlu1 %1165 }
 0x307   : > { %v905_v28 = vpop.permute.xlu0 %904  ;;  %778 = vadd.xlane.f32.xlu1 %v777_v26  ;;  %v786_v31 = vsel %vm728_vm2, %v5203_v27, 0.0 }
 0x308   : > { %4303 = vmatprep.subr.mxu1 %v905_v28 }
 0x309   : > { %v4611_v29 = vpop.eup %4610  ;;  %4304 = vmatpush3.msra.mxu1 %v905_v28 }
 0x30a   : > { %v789_v30 = vsel %vm728_vm2, %v4611_v29, 0.0  ;;  %v5229_v41 = vpop.permute.xlu1 %1353 }
 0x30b   : > { %790 = vadd.xlane.f32.xlu0 %v789_v30  ;;  %v5208_v32 = vpop.permute.xlu0 %1080  ;;  %787 = vadd.xlane.f32.xlu1 %v786_v31 }
 0x30c   : > { %4315 = vmatprep.subr.mxu1 %v5208_v32 }
 0x30d   : > { %v5211_v33 = vpop.eup %4612 }
 0x30e   : > { %v783_v34 = vsel %vm728_vm2, %v5211_v33, 0.0 }
 0x30f   : > { %784 = vadd.xlane.f32.xlu1 %v783_v34  ;;  %v1079_v47 = vpop.permute.xlu0 %1078 }
 0x311   : > { %v5215_v35 = vpop.eup %4614 }
 0x312   : > { %v798_v36 = vsel %vm728_vm2, %v5215_v35, 0.0 }
 0x313   : > { %799 = vadd.xlane.f32.xlu0 %v798_v36  ;;  %v5244_v48 = vpop.permute.xlu0 %1262 }
 0x317   : > { %v5246_v49 = vpop.permute.xlu0 %1260 }
 0x31b   : > { %v1168_v50 = vpop.permute.xlu0 %1167 }
 0x320   : > { %1444 = vrot.lane.b32.xlu1 %v5110_v18, %s4887_s27 }
 0x329   : > { %1351 = vrot.lane.b32.xlu0 %v5102_v16, %s4887_s27 }
 0x32d   : > { %1258 = vrot.lane.b32.xlu0 %v5098_v15, %s4888_s28 }
 0x331   : > { %1349 = vrot.lane.b32.xlu0 %v5096_v14, %s4888_s28 }
 0x335   : > { %1438 = vrot.lane.b32.xlu0 %v5114_v19, %s4888_s28 }
 0x33b   : > { %v749_v42 = vpop.xlane.xlu1 %748 }
 0x33c   : > { %v759_v43 = vsub.f32 %v5182_v51, %v749_v42 }
 0x33e   : > { %v773_v44 = vmul.f32 1.442695, %v759_v43 }
 0x33f   : > { %v5248_v51 = vpop.permute.xlu1 %1256 }
 0x340   : > { %4616 = vpow2.f32 %v773_v44 }
 0x34d   : > { %v5232_v45 = vpop.eup %4616 }
 0x34e   : > { %v795_v46 = vsel %vm728_vm2, %v5232_v45, 0.0 }
 0x34f   : > { %796 = vadd.xlane.f32.xlu1 %v795_v46 }
 0x360   : > { %1347 = vrot.lane.b32.xlu1 %v5102_v16, %s4888_s28 }
 0x364   : > { %1442 = vrot.lane.b32.xlu1 %v5114_v19, %s4887_s27  ;;  %s5828_s27 = scalar_lea.hbm %s5876_s3, %s4093_s18 }
 0x368   : > { %1440 = vrot.lane.b32.xlu1 %v5110_v18, %s4888_s28  ;;  %s3852_s28 = scalar_lea.sflag [#allocation4], %s5057_s5 }
 0x36c   : > { %1627 = vrot.lane.b32.xlu1 %v5089_v12, %s4889_s25 }
 0x383   : > { %v782_v52 = vpop.xlane.xlu0 %781 }
 0x384   : > { %4618 = vrcp.f32 %v782_v52 }
 0x38c   : > { %v794_v53 = vpop.xlane.xlu0 %793 }
 0x390   : > { %v779_v54 = vpop.xlane.xlu1 %778 }
 0x391   : > { %4620 = vrcp.f32 %v779_v54  ;;  %v4619_v58 = vpop.eup %4618 }
 0x392   : > { %4622 = vrcp.f32 %v794_v53  ;;  %v810_v61 = vmul.f32 %v4619_v58, %v5188_v3 }
 0x394   : > { %v791_v55 = vpop.xlane.xlu0 %790  ;;  %v788_v56 = vpop.xlane.xlu1 %787 }
 0x395   : > { %4624 = vrcp.f32 %v791_v55 }
 0x396   : > { %4626 = vrcp.f32 %v788_v56 }
 0x398   : > { %v785_v57 = vpop.xlane.xlu1 %784 }
 0x399   : > { %4628 = vrcp.f32 %v785_v57 }
 0x39c   : > { %v800_v6 = vpop.xlane.xlu0 %799  ;;  %v1445_v8 = vpop.permute.xlu1 %1444 }
 0x39d   : > { %4630 = vrcp.f32 %v800_v6 }
 0x39e   : > { %v4621_v59 = vpop.eup %4620 }
 0x39f   : > { %v809_v60 = vmul.f32 %v4621_v59, %v5196_v24  ;;  %v4623_v62 = vpop.eup %4622 }
 0x3a0   : > { %v814_v1 = vmul.f32 %v4623_v62, %v5192_v20  ;;  %v1352_v7 = vpop.permute.xlu0 %1351 }
 0x3a1   : > { %4298 = vmatprep.mubr.msk.f32.mxu0 %vm728_vm2, %v809_v60 }
 0x3a2   : > { %v4625_v63 = vpop.eup %4624  ;;  %4299 = vmatmul.mubr.msk.f32.vlgmr.msra.gmra.mxu0 %vm728_vm2, %v810_v61 }
 0x3a3   : > { %4309 = vmatpush3.msra.mxu0 %v5198_v25  ;;  %v813_v0 = vmul.f32 %v4625_v63, %v4611_v29  ;;  %v4627_v2 = vpop.eup %4626 }
 0x3a4   : > { %4310 = vmatprep.subr.mxu0 %v992_v37  ;;  %v812_v5 = vmul.f32 %v4627_v2, %v5203_v27  ;;  %v1259_v9 = vpop.permute.xlu0 %1258 }
 0x3a5   : > { %4311 = vmatpush3.msra.mxu0 %v992_v37  ;;  %4312 = vmatprep.mubr.msk.f32.mxu0 %vm728_vm2, %v813_v0 }
 0x3a6   : > { %v4629_v4 = vpop.eup %4628  ;;  %4322 = vmatprep.subr.msk.mxu0 %vm369_vm1, %v1172_v38  ;;  %4313 = vmatmul.mubr.msk.f32.vlgmr.msra.gmra.mxu0 %vm728_vm2, %v814_v1 }
 0x3a7   : > { %4323 = vmatpush3.xpose.msk.msra.mxu0 %vm369_vm1, %v1172_v38  ;;  %4326 = vmatprep.mubr.msk.f32.mxu0 %vm369_vm1, %v1166_v40  ;;  %v811_v3 = vmul.f32 %v4629_v4, %v5211_v33 }
 0x3a8   : > { %4324 = vmatprep.subr.msk.mxu0 %vm369_vm1, %v1170_v39  ;;  %v1350_v20 = vpop.permute.xlu0 %1349 }
 0x3a9   : > { %4305 = vmatprep.mubr.msk.f32.mxu1 %vm728_vm2, %v811_v3 }
 0x3aa   : > { %4306 = vmatmul.mubr.msk.f32.vlgmr.msra.gmra.mxu1 %vm728_vm2, %v812_v5  ;;  %v4631_v23 = vpop.eup %4630 }
 0x3ab   : > { %4316 = vmatpush3.msra.mxu1 %v5208_v32  ;;  %4325 = vmatpush3.xpose.msk.msra.mxu0 %vm369_vm1, %v1170_v39  ;;  %v816_v27 = vmul.f32 %v4631_v23, %v5215_v35 }
 0x3ac   : > { %4317 = vmatprep.subr.mxu1 %v1079_v47  ;;  %4336 = vmatprep.subr.msk.mxu0 %vm369_vm1, %v5229_v41  ;;  %v1439_v28 = vpop.permute.xlu0 %1438 }
 0x3ad   : > { %4318 = vmatpush3.msra.mxu1 %v1079_v47 }
 0x3ae   : > { %4327 = vmatmul.mubr.msk.f32.vlgmr.msra.gmra.mxu0 %vm369_vm1, %v1168_v50  ;;  %4329 = vmatprep.subr.msk.mxu1 %vm369_vm1, %v5244_v48 }
 0x3af   : > { %4337 = vmatpush3.xpose.msk.msra.mxu0 %vm369_vm1, %v5229_v41 }
 0x3b0   : > { %4338 = vmatprep.subr.msk.mxu0 %vm369_vm1, %v1352_v7 }
 0x3b3   : > { %4339 = vmatpush3.xpose.msk.msra.mxu0 %vm369_vm1, %v1352_v7 }
 0x3d8   : > { %v797_v10 = vpop.xlane.xlu1 %796 }
 0x3d9   : > { %4632 = vrcp.f32 %v797_v10 }
 0x3dc   : > { %v1348_v11 = vpop.permute.xlu1 %1347 }
 0x3dd   : > { %4340 = vmatprep.mubr.msk.f32.mxu0 %vm369_vm1, %v1348_v11 }
 0x3de   : > { %4341 = vmatmul.mubr.msk.f32.vlgmr.msra.gmra.mxu0 %vm369_vm1, %v1350_v20 }
 0x3e0   : > { %v1443_v21 = vpop.permute.xlu1 %1442 }
 0x3e4   : > { %v1441_v22 = vpop.permute.xlu1 %1440 }
 0x3e6   : > { %v4633_v24 = vpop.eup %4632 }
 0x3e7   : > { %v815_v25 = vmul.f32 %v4633_v24, %v5232_v45 }
 0x3e8   : > { %v1628_v26 = vpop.permute.xlu1 %1627 }
 0x3e9   : > { %4319 = vmatprep.mubr.msk.f32.mxu1 %vm728_vm2, %v815_v25  ;;  %4350 = vmatprep.subr.mxu0 %v1628_v26 }
 0x3ea   : > { %4320 = vmatmul.mubr.msk.f32.vlgmr.msra.gmra.mxu1 %vm728_vm2, %v816_v27  ;;  %4351 = vmatpush3.msra.mxu0 %v1628_v26 }
 0x3eb   : > { %4330 = vmatpush3.xpose.msk.msra.mxu1 %vm369_vm1, %v5244_v48  ;;  %4333 = vmatprep.mubr.msk.f32.mxu1 %vm369_vm1, %v5248_v51 }
 0x3ec   : > { %4331 = vmatprep.subr.msk.mxu1 %vm369_vm1, %v5246_v49 }
 0x3ef   : > { %4332 = vmatpush3.xpose.msk.msra.mxu1 %vm369_vm1, %v5246_v49 }
 0x3f0   : > { %4343 = vmatprep.subr.msk.mxu1 %vm369_vm1, %v1445_v8 }
 0x3f2   : > { %4334 = vmatmul.mubr.msk.f32.vlgmr.msra.gmra.mxu1 %vm369_vm1, %v1259_v9 }
 0x3f3   : > { %4344 = vmatpush3.xpose.msk.msra.mxu1 %vm369_vm1, %v1445_v8  ;;  %4347 = vmatprep.mubr.msk.f32.mxu1 %vm369_vm1, %v1439_v28 }
 0x3f4   : > { %4345 = vmatprep.subr.msk.mxu1 %vm369_vm1, %v1443_v21 }
 0x3f7   : > { %4346 = vmatpush3.xpose.msk.msra.mxu1 %vm369_vm1, %v1443_v21 }
 0x3fa   : > { %4348 = vmatmul.mubr.msk.f32.vlgmr.msra.gmra.mxu1 %vm369_vm1, %v1441_v22 }
 0x462   : > { %v5298_v29 = vpop.f32.mrf.mxu0 }
 0x464   : > { %v5300_v30 = vpop.f32.mrf.mxu0 }
 0x466   : > { %v5302_v31 = vpop.f32.mrf.mxu0 }
 0x468   : > { %v5304_v32 = vpop.f32.mrf.mxu0 }
 0x46a   : > { %v5310_v45 = vpop.f32.mrf.mxu1 }
 0x46c   : > { %v5312_v46 = vpop.f32.mrf.mxu1 }
 0x46e   : > { %v4328_v33 = vpop.f32.mrf.mxu0 }
 0x46f   : > { %v1530_v34 = vmul.f32 0.35355338, %v4328_v33 }
 0x470   : > { %v1247_v35 = vpop.f32.mrf.mxu0 }
 0x471   : > { %v1529_v36 = vmul.f32 0.35355338, %v1247_v35  ;;  %v1540_v37 = vsel %vm728_vm2, %v1530_v34, -inf }
 0x472   : > { %1541 = vmax.xlane.f32.xlu1 %v1540_v37 }
 0x473   : > { %v1537_v38 = vsel %vm728_vm2, %v1529_v36, -inf }
 0x474   : > { %1538 = vmax.xlane.f32.xlu0 %v1537_v38 }
 0x49e   : > { %v4342_v39 = vpop.f32.mrf.mxu0 }
 0x49f   : > { %v1534_v40 = vmul.f32 0.35355338, %v4342_v39 }
 0x4a0   : > { %v1429_v41 = vpop.f32.mrf.mxu0 }
 0x4a1   : > { %v1533_v42 = vmul.f32 0.35355338, %v1429_v41  ;;  %v1552_v43 = vsel %vm728_vm2, %v1534_v40, -inf }
 0x4a2   : > { %1553 = vmax.xlane.f32.xlu0 %v1552_v43 }
 0x4a3   : > { %v1549_v44 = vsel %vm728_vm2, %v1533_v42, -inf }
 0x4a6   : > { %1550 = vmax.xlane.f32.xlu0 %v1549_v44 }
 0x4aa   : > { %v5314_v47 = vpop.f32.mrf.mxu1 }
 0x4ac   : > { %v5316_v48 = vpop.f32.mrf.mxu1 }
 0x4b2   : > { %v4335_v49 = vpop.f32.mrf.mxu1 }
 0x4b3   : > { %v1532_v50 = vmul.f32 0.35355338, %v4335_v49 }
 0x4b4   : > { %v1338_v51 = vpop.f32.mrf.mxu1 }
 0x4b5   : > { %v5318_v52 = vmul.f32 0.35355338, %v1338_v51  ;;  %v1546_v53 = vsel %vm728_vm2, %v1532_v50, -inf }
 0x4b6   : > { %1547 = vmax.xlane.f32.xlu1 %v1546_v53 }
 0x4b7   : > { %v1543_v54 = vsel %vm728_vm2, %v5318_v52, -inf }
 0x4b8   : > { %1544 = vmax.xlane.f32.xlu0 %v1543_v54 }
 0x4ba   : > { %v4349_v55 = vpop.f32.mrf.mxu1 }
 0x4bb   : > { %v5323_v56 = vmul.f32 0.35355338, %v4349_v55 }
 0x4bc   : > { %v1520_v58 = vpop.f32.mrf.mxu1 }
 0x4bd   : > { %v1558_v57 = vsel %vm728_vm2, %v5323_v56, -inf  ;;  %v5355_v61 = vmul.f32 0.35355338, %v1520_v58 }
 0x4be   : > { %1559 = vmax.xlane.f32.xlu0 %v1558_v57 }
 0x4bf   : > { %v1555_v63 = vsel %vm728_vm2, %v5355_v61, -inf }
 0x4c7   : > { %1714 = vrot.lane.b32.xlu1 %v5098_v15, %s4889_s25 }
 0x4cb   : > { %1801 = vrot.lane.b32.xlu1 %v5096_v14, %s4889_s25 }
 0x4cf   : > { %1799 = vrot.lane.b32.xlu1 %v5102_v16, %s4889_s25 }
 0x4d3   : > { %1979 = vrot.lane.b32.xlu1 %v5089_v12, %s4890_s29 }
 0x4d4   : > { %1625 = vrot.lane.b32.xlu0 %v5092_v13, %s4889_s25 }
 0x4d7   : > { %1977 = vrot.lane.b32.xlu1 %v5092_v13, %s4890_s29 }
 0x4d8   : > { %1712 = vrot.lane.b32.xlu0 %v5104_v17, %s4889_s25 }
 0x4db   : > { %1973 = vrot.lane.b32.xlu1 %v5092_v13, %s4891_s4 }
 0x4dc   : > { %1888 = vrot.lane.b32.xlu0 %v5110_v18, %s4889_s25 }
 0x4df   : > { %2161 = vrot.lane.b32.xlu1 %v5096_v14, %s4890_s29 }
 0x4e0   : > { %1886 = vrot.lane.b32.xlu0 %v5114_v19, %s4889_s25  ;;  %s4899_s25 = smov [#allocation8]  }
 0x4e4   : > { %2070 = vrot.lane.b32.xlu0 %v5098_v15, %s4890_s29 }
 0x4e8   : > { %2068 = vrot.lane.b32.xlu0 %v5104_v17, %s4890_s29 }
 0x4ec   : > { %1975 = vrot.lane.b32.xlu0 %v5089_v12, %s4891_s4 }
 0x4fb   : > { %v1542_v59 = vpop.xlane.xlu1 %1541 }
 0x4fc   : > { %v1562_v60 = vsub.f32 %v1530_v34, %v1542_v59 }
 0x4fd   : > { %v1539_v2 = vpop.xlane.xlu0 %1538 }
 0x4fe   : > { %v1571_v62 = vmul.f32 1.442695, %v1562_v60  ;;  %v1561_v4 = vsub.f32 %v1529_v36, %v1539_v2 }
 0x500   : > { %4634 = vpow2.f32 %v1571_v62  ;;  %v1569_v3 = vmul.f32 1.442695, %v1561_v4 }
 0x502   : > { %4636 = vpow2.f32 %v1569_v3 }
 0x503   : > { %1556 = vmax.xlane.f32.xlu1 %v1555_v63 }
 0x50d   : > { %v5359_v0 = vpop.eup %4634 }
 0x50e   : > { %v1588_v1 = vsel %vm728_vm2, %v5359_v0, 0.0 }
 0x50f   : > { %1589 = vadd.xlane.f32.xlu0 %v1588_v1  ;;  %v5365_v11 = vpop.eup %4636 }
 0x510   : > { %v1585_v20 = vsel %vm728_vm2, %v5365_v11, 0.0 }
 0x514   : > { %2064 = vrot.lane.b32.xlu1 %v5104_v17, %s4891_s4 }
 0x52b   : > { %v1554_v5 = vpop.xlane.xlu0 %1553 }
 0x52c   : > { %v1566_v6 = vsub.f32 %v1534_v40, %v1554_v5 }
 0x52e   : > { %v1579_v7 = vmul.f32 1.442695, %v1566_v6 }
 0x52f   : > { %v1551_v8 = vpop.xlane.xlu0 %1550 }
 0x530   : > { %4638 = vpow2.f32 %v1579_v7  ;;  %v1565_v9 = vsub.f32 %v1533_v42, %v1551_v8 }
 0x532   : > { %v1577_v10 = vmul.f32 1.442695, %v1565_v9 }
 0x534   : > { %4640 = vpow2.f32 %v1577_v10 }
 0x538   : > { %1586 = vadd.xlane.f32.xlu1 %v1585_v20 }
 0x53d   : > { %v5369_v21 = vpop.eup %4638 }
 0x53e   : > { %v1600_v22 = vsel %vm728_vm2, %v5369_v21, 0.0 }
 0x53f   : > { %v1548_v23 = vpop.xlane.xlu1 %1547  ;;  %1601 = vadd.xlane.f32.xlu0 %v1600_v22 }
 0x540   : > { %v1564_v24 = vsub.f32 %v1532_v50, %v1548_v23 }
 0x541   : > { %v5373_v25 = vpop.eup %4640  ;;  %v1545_v26 = vpop.xlane.xlu0 %1544 }
 0x542   : > { %v1575_v27 = vmul.f32 1.442695, %v1564_v24  ;;  %v1563_v28 = vsub.f32 %v5318_v52, %v1545_v26  ;;  %v1597_v33 = vsel %vm728_vm2, %v5373_v25, 0.0 }
 0x543   : > { %v1715_v34 = vpop.permute.xlu1 %1714  ;;  %1598 = vadd.xlane.f32.xlu0 %v1597_v33 }
 0x544   : > { %4642 = vpow2.f32 %v1575_v27  ;;  %v1573_v35 = vmul.f32 1.442695, %v1563_v28  ;;  %4357 = vmatprep.subr.mxu1 %v1715_v34 }
 0x545   : > { %4358 = vmatpush3.msra.mxu1 %v1715_v34 }
 0x546   : > { %4644 = vpow2.f32 %v1573_v35 }
 0x547   : > { %v1560_v36 = vpop.xlane.xlu0 %1559  ;;  %v1802_v40 = vpop.permute.xlu1 %1801 }
 0x548   : > { %v1568_v37 = vsub.f32 %v5323_v56, %v1560_v36 }
 0x54a   : > { %v1583_v38 = vmul.f32 1.442695, %v1568_v37 }
 0x54b   : > { %v1626_v39 = vpop.permute.xlu0 %1625  ;;  %v1800_v53 = vpop.permute.xlu1 %1799 }
 0x54c   : > { %4646 = vpow2.f32 %v1583_v38  ;;  %4352 = vmatprep.subr.mxu0 %v1626_v39 }
 0x54d   : > { %4353 = vmatpush3.msra.mxu0 %v1626_v39 }
 0x54e   : > { %4364 = vmatprep.subr.mxu0 %v1802_v40 }
 0x54f   : > { %v1713_v41 = vpop.permute.xlu0 %1712  ;;  %v1980_v54 = vpop.permute.xlu1 %1979 }
 0x550   : > { %4359 = vmatprep.subr.mxu1 %v1713_v41 }
 0x551   : > { %v5379_v42 = vpop.eup %4642  ;;  %4360 = vmatpush3.msra.mxu1 %v1713_v41 }
 0x552   : > { %v1594_v43 = vsel %vm728_vm2, %v5379_v42, 0.0 }
 0x553   : > { %v5383_v44 = vpop.eup %4644  ;;  %v5385_v49 = vpop.permute.xlu0 %1888  ;;  %1595 = vadd.xlane.f32.xlu1 %v1594_v43 }
 0x554   : > { %4371 = vmatprep.subr.mxu1 %v5385_v49  ;;  %v1591_v50 = vsel %vm728_vm2, %v5383_v44, 0.0  ;;  %v1978_v55 = vpop.permute.xlu1 %1977 }
 0x557   : > { %1592 = vadd.xlane.f32.xlu1 %v1591_v50  ;;  %v1887_v1 = vpop.permute.xlu0 %1886 }
 0x558   : > { %v1974_v56 = vpop.permute.xlu1 %1973 }
 0x559   : > { %v5390_v51 = vpop.eup %4646 }
 0x55a   : > { %v1606_v52 = vsel %vm728_vm2, %v5390_v51, 0.0 }
 0x55b   : > { %1607 = vadd.xlane.f32.xlu0 %v1606_v52  ;;  %v5409_v2 = vpop.permute.xlu0 %2070 }
 0x55c   : > { %v2162_v57 = vpop.permute.xlu1 %2161 }
 0x55f   : > { %v5413_v4 = vpop.permute.xlu0 %2068 }
 0x568   : > { %2252 = vrot.lane.b32.xlu1 %v5110_v18, %s4890_s29 }
 0x571   : > { %2159 = vrot.lane.b32.xlu0 %v5102_v16, %s4890_s29 }
 0x575   : > { %2066 = vrot.lane.b32.xlu0 %v5098_v15, %s4891_s4 }
 0x579   : > { %2157 = vrot.lane.b32.xlu0 %v5096_v14, %s4891_s4 }
 0x57d   : > { %2246 = vrot.lane.b32.xlu0 %v5114_v19, %s4891_s4 }
 0x58c   : > { %v1557_v58 = vpop.xlane.xlu1 %1556 }
 0x58d   : > { %v1567_v59 = vsub.f32 %v5355_v61, %v1557_v58  ;;  %v1976_v61 = vpop.permute.xlu0 %1975 }
 0x58f   : > { %v1581_v60 = vmul.f32 1.442695, %v1567_v59 }
 0x590   : > { %v5419_v3 = vpop.permute.xlu1 %2064 }
 0x591   : > { %4648 = vpow2.f32 %v1581_v60 }
 0x598   : > { %v1590_v5 = vpop.xlane.xlu0 %1589 }
 0x599   : > { %4650 = vrcp.f32 %v1590_v5 }
 0x59e   : > { %v5405_v62 = vpop.eup %4648 }
 0x59f   : > { %v1603_v63 = vsel %vm728_vm2, %v5405_v62, 0.0 }
 0x5a0   : > { %1604 = vadd.xlane.f32.xlu1 %v1603_v63 }
 0x5a6   : > { %v4651_v9 = vpop.eup %4650 }
 0x5a7   : > { %v1618_v22 = vmul.f32 %v4651_v9, %v5359_v0 }
 0x5b1   : > { %2155 = vrot.lane.b32.xlu1 %v5102_v16, %s4891_s4 }
 0x5b5   : > { %2250 = vrot.lane.b32.xlu1 %v5114_v19, %s4890_s29  ;;  %s4814_s29 = sshll.u32 %s4899_s25, 4  ;;  %s4815_s29 = int_to_ptr.vmem [resolvable:$false] %s4814_s29 }
 0x5b6   : > { %p4817_p13 = scmp.lt.s32.totalorder %s5822_s30, %s4815_s29 }
 0x5b9   : > { %2248 = vrot.lane.b32.xlu1 %v5110_v18, %s4891_s4  ;;  %s4816_s4 = scalar_lea.vmem %s4815_s29, 2048 }
 0x5ba   : > { %p4818_p0 = scmp.lt.s32.totalorder %s4816_s4, %s4810_s16 }
 0x5bc   : > { %p4819_p10 = por %p4818_p0, %p4817_p13 }
 0x5bd   : > { %2435 = vrot.lane.b32.xlu1 %v5089_v12, %s4892_s9 }
 0x5be   : > { %p4820_p3 = pnand %p4819_p10, %p4813_p12 }
 0x5c1   : > { %v1587_v6 = vpop.xlane.xlu1 %1586 }
 0x5c2   : > { %4652 = vrcp.f32 %v1587_v6 }
 0x5c8   : > { %v1602_v7 = vpop.xlane.xlu0 %1601 }
 0x5c9   : > { %4654 = vrcp.f32 %v1602_v7 }
 0x5cc   : > { %v1599_v8 = vpop.xlane.xlu0 %1598 }
 0x5cd   : > { %4656 = vrcp.f32 %v1599_v8 }
 0x5cf   : > { %v4653_v10 = vpop.eup %4652 }
 0x5d0   : > { %v1617_v20 = vmul.f32 %v4653_v10, %v5365_v11 }
 0x5d2   : > { %4354 = vmatprep.mubr.msk.f32.mxu0 %vm728_vm2, %v1617_v20 }
 0x5d3   : > { %4355 = vmatmul.mubr.msk.f32.vlgmr.msra.gmra.mxu0 %vm728_vm2, %v1618_v22 }
 0x5d4   : > { %4365 = vmatpush3.msra.mxu0 %v1802_v40 }
 0x5d5   : > { %4366 = vmatprep.subr.mxu0 %v1800_v53 }
 0x5d6   : > { %4367 = vmatpush3.msra.mxu0 %v1800_v53  ;;  %v4655_v23 = vpop.eup %4654 }
 0x5d7   : > { %4378 = vmatprep.subr.msk.mxu0 %vm369_vm1, %v1980_v54  ;;  %v1622_v28 = vmul.f32 %v4655_v23, %v5369_v21 }
 0x5da   : > { %v4657_v24 = vpop.eup %4656 }
 0x5db   : > { %v1621_v26 = vmul.f32 %v4657_v24, %v5373_v25 }
 0x5dc   : > { %v1596_v27 = vpop.xlane.xlu1 %1595 }
 0x5dd   : > { %4368 = vmatprep.mubr.msk.f32.mxu0 %vm728_vm2, %v1621_v26  ;;  %4658 = vrcp.f32 %v1596_v27 }
 0x5de   : > { %4369 = vmatmul.mubr.msk.f32.vlgmr.msra.gmra.mxu0 %vm728_vm2, %v1622_v28 }
 0x5df   : > { %4379 = vmatpush3.xpose.msk.msra.mxu0 %vm369_vm1, %v1980_v54  ;;  %4382 = vmatprep.mubr.msk.f32.mxu0 %vm369_vm1, %v1974_v56 }
 0x5e0   : > { %4380 = vmatprep.subr.msk.mxu0 %vm369_vm1, %v1978_v55  ;;  %v1593_v0 = vpop.xlane.xlu1 %1592 }
 0x5e1   : > { %4660 = vrcp.f32 %v1593_v0 }
 0x5e3   : > { %4381 = vmatpush3.xpose.msk.msra.mxu0 %vm369_vm1, %v1978_v55 }
 0x5e4   : > { %v1608_v11 = vpop.xlane.xlu0 %1607  ;;  %4392 = vmatprep.subr.msk.mxu0 %vm369_vm1, %v2162_v57  ;;  %v2253_v36 = vpop.permute.xlu1 %2252 }
 0x5e5   : > { %4662 = vrcp.f32 %v1608_v11 }
 0x5e6   : > { %4383 = vmatmul.mubr.msk.f32.vlgmr.msra.gmra.mxu0 %vm369_vm1, %v1976_v61 }
 0x5e7   : > { %4393 = vmatpush3.xpose.msk.msra.mxu0 %vm369_vm1, %v2162_v57 }
 0x5e8   : > { %v2160_v21 = vpop.permute.xlu0 %2159 }
 0x5e9   : > { %4394 = vmatprep.subr.msk.mxu0 %vm369_vm1, %v2160_v21 }
 0x5ea   : > { %v4659_v25 = vpop.eup %4658 }
 0x5eb   : > { %4395 = vmatpush3.xpose.msk.msra.mxu0 %vm369_vm1, %v2160_v21  ;;  %v1620_v35 = vmul.f32 %v4659_v25, %v5379_v42 }
 0x5ec   : > { %v2067_v37 = vpop.permute.xlu0 %2066 }
 0x5ee   : > { %v4661_v33 = vpop.eup %4660 }
 0x5ef   : > { %v1619_v34 = vmul.f32 %v4661_v33, %v5383_v44 }
 0x5f0   : > { %v2158_v40 = vpop.permute.xlu0 %2157 }
 0x5f1   : > { %4361 = vmatprep.mubr.msk.f32.mxu1 %vm728_vm2, %v1619_v34 }
 0x5f2   : > { %4362 = vmatmul.mubr.msk.f32.vlgmr.msra.gmra.mxu1 %vm728_vm2, %v1620_v35  ;;  %v4663_v43 = vpop.eup %4662 }
 0x5f3   : > { %4372 = vmatpush3.msra.mxu1 %v5385_v49  ;;  %v1624_v52 = vmul.f32 %v4663_v43, %v5390_v51 }
 0x5f4   : > { %4373 = vmatprep.subr.mxu1 %v1887_v1  ;;  %v2247_v51 = vpop.permute.xlu0 %2246 }
 0x5f5   : > { %4374 = vmatpush3.msra.mxu1 %v1887_v1 }
 0x5f6   : > { %4385 = vmatprep.subr.msk.mxu1 %vm369_vm1, %v5409_v2 }
 0x629   : > { %v1605_v38 = vpop.xlane.xlu1 %1604 }
 0x62a   : > { %4664 = vrcp.f32 %v1605_v38 }
 0x62d   : > { %v2156_v39 = vpop.permute.xlu1 %2155 }
 0x62e   : > { %4396 = vmatprep.mubr.msk.f32.mxu0 %vm369_vm1, %v2156_v39 }
 0x62f   : > { %4397 = vmatmul.mubr.msk.f32.vlgmr.msra.gmra.mxu0 %vm369_vm1, %v2158_v40 }
 0x631   : > { %v2251_v41 = vpop.permute.xlu1 %2250 }
 0x635   : > { %v2249_v42 = vpop.permute.xlu1 %2248 }
 0x637   : > { %v4665_v44 = vpop.eup %4664 }
 0x638   : > { %v1623_v49 = vmul.f32 %v4665_v44, %v5405_v62 }
 0x639   : > { %v2436_v50 = vpop.permute.xlu1 %2435 }
 0x63a   : > { %4375 = vmatprep.mubr.msk.f32.mxu1 %vm728_vm2, %v1623_v49  ;;  %4406 = vmatprep.subr.mxu0 %v2436_v50 }
 0x63b   : > { %4376 = vmatmul.mubr.msk.f32.vlgmr.msra.gmra.mxu1 %vm728_vm2, %v1624_v52  ;;  %4407 = vmatpush3.msra.mxu0 %v2436_v50 }
 0x63c   : > { %4386 = vmatpush3.xpose.msk.msra.mxu1 %vm369_vm1, %v5409_v2  ;;  %4389 = vmatprep.mubr.msk.f32.mxu1 %vm369_vm1, %v5419_v3 }
 0x63d   : > { %4387 = vmatprep.subr.msk.mxu1 %vm369_vm1, %v5413_v4 }
 0x640   : > { %4388 = vmatpush3.xpose.msk.msra.mxu1 %vm369_vm1, %v5413_v4 }
 0x641   : > { %4399 = vmatprep.subr.msk.mxu1 %vm369_vm1, %v2253_v36 }
 0x643   : > { %4390 = vmatmul.mubr.msk.f32.vlgmr.msra.gmra.mxu1 %vm369_vm1, %v2067_v37 }
 0x644   : > { %4400 = vmatpush3.xpose.msk.msra.mxu1 %vm369_vm1, %v2253_v36  ;;  %4403 = vmatprep.mubr.msk.f32.mxu1 %vm369_vm1, %v2247_v51 }
 0x645   : > { %4401 = vmatprep.subr.msk.mxu1 %vm369_vm1, %v2251_v41 }
 0x648   : > { %4402 = vmatpush3.xpose.msk.msra.mxu1 %vm369_vm1, %v2251_v41 }
 0x64b   : > { %4404 = vmatmul.mubr.msk.f32.vlgmr.msra.gmra.mxu1 %vm369_vm1, %v2249_v42 }
 0x693   : > { %v5469_v53 = vpop.f32.mrf.mxu0 }
 0x695   : > { %v5471_v54 = vpop.f32.mrf.mxu0 }
 0x69e   : > { %v5473_v55 = vpop.f32.mrf.mxu0 }
 0x6a0   : > { %v5475_v56 = vpop.f32.mrf.mxu0 }
 0x6a6   : > { %v4384_v57 = vpop.f32.mrf.mxu0 }
 0x6a7   : > { %v2338_v58 = vmul.f32 0.35355338, %v4384_v57 }
 0x6a8   : > { %v2055_v59 = vpop.f32.mrf.mxu0 }
 0x6a9   : > { %v2337_v60 = vmul.f32 0.35355338, %v2055_v59  ;;  %v2348_v62 = vsel %vm728_vm2, %v2338_v58, -inf }
 0x6aa   : > { %2349 = vmax.xlane.f32.xlu1 %v2348_v62 }
 0x6ab   : > { %v2345_v63 = vsel %vm728_vm2, %v2337_v60, -inf }
 0x6ac   : > { %2346 = vmax.xlane.f32.xlu0 %v2345_v63 }
 0x6b2   : > { %v5481_v6 = vpop.f32.mrf.mxu1 }
 0x6b4   : > { %v5483_v7 = vpop.f32.mrf.mxu1 }
 0x6ef   : > { %v4398_v1 = vpop.f32.mrf.mxu0 }
 0x6f0   : > { %v2342_v2 = vmul.f32 0.35355338, %v4398_v1 }
 0x6f1   : > { %v2237_v4 = vpop.f32.mrf.mxu0 }
 0x6f2   : > { %v2341_v61 = vmul.f32 0.35355338, %v2237_v4  ;;  %v2360_v3 = vsel %vm728_vm2, %v2342_v2, -inf }
 0x6f3   : > { %2361 = vmax.xlane.f32.xlu0 %v2360_v3 }
 0x6f4   : > { %v2357_v5 = vsel %vm728_vm2, %v2341_v61, -inf }
 0x6f7   : > { %2358 = vmax.xlane.f32.xlu0 %v2357_v5 }
 0x6fb   : > { %v5485_v8 = vpop.f32.mrf.mxu1 }
 0x6fd   : > { %v5487_v9 = vpop.f32.mrf.mxu1 }
 0x703   : > { %v4391_v10 = vpop.f32.mrf.mxu1 }
 0x704   : > { %v2340_v20 = vmul.f32 0.35355338, %v4391_v10 }
 0x705   : > { %v2146_v22 = vpop.f32.mrf.mxu1 }
 0x706   : > { %v5489_v23 = vmul.f32 0.35355338, %v2146_v22  ;;  %v2354_v24 = vsel %vm728_vm2, %v2340_v20, -inf }
 0x707   : > { %2355 = vmax.xlane.f32.xlu1 %v2354_v24 }
 0x708   : > { %v2351_v26 = vsel %vm728_vm2, %v5489_v23, -inf }
 0x709   : > { %2352 = vmax.xlane.f32.xlu0 %v2351_v26 }
 0x70b   : > { %v4405_v27 = vpop.f32.mrf.mxu1 }
 0x70c   : > { %v5494_v28 = vmul.f32 0.35355338, %v4405_v27 }
 0x70d   : > { %v2328_v33 = vpop.f32.mrf.mxu1 }
 0x70e   : > { %v2366_v0 = vsel %vm728_vm2, %v5494_v28, -inf  ;;  %v5526_v34 = vmul.f32 0.35355338, %v2328_v33 }
 0x70f   : > { %2367 = vmax.xlane.f32.xlu0 %v2366_v0 }
 0x710   : > { %v2363_v35 = vsel %vm728_vm2, %v5526_v34, -inf }
 0x718   : > { %2522 = vrot.lane.b32.xlu1 %v5098_v15, %s4892_s9 }
 0x71c   : > { %2609 = vrot.lane.b32.xlu1 %v5096_v14, %s4892_s9 }
 0x720   : > { %2607 = vrot.lane.b32.xlu1 %v5102_v16, %s4892_s9 }
 0x724   : > { %2787 = vrot.lane.b32.xlu1 %v5089_v12, %s4893_s21 }
 0x725   : > { %2433 = vrot.lane.b32.xlu0 %v5092_v13, %s4892_s9 }
 0x728   : > { %2785 = vrot.lane.b32.xlu1 %v5092_v13, %s4893_s21 }
 0x729   : > { %2520 = vrot.lane.b32.xlu0 %v5104_v17, %s4892_s9 }
 0x72c   : > { %2781 = vrot.lane.b32.xlu1 %v5092_v13, %s4894_s22 }
 0x72d   : > { %2696 = vrot.lane.b32.xlu0 %v5110_v18, %s4892_s9 }
 0x730   : > { %2876 = vrot.lane.b32.xlu1 %v5104_v17, %s4893_s21 }
 0x731   : > { %2694 = vrot.lane.b32.xlu0 %v5114_v19, %s4892_s9 }
 0x733   : > { %v2350_v11 = vpop.xlane.xlu1 %2349 }
 0x734   : > { %v2370_v21 = vsub.f32 %v2338_v58, %v2350_v11 }
 0x735   : > { %2878 = vrot.lane.b32.xlu0 %v5098_v15, %s4893_s21  ;;  %v2347_v38 = vpop.xlane.xlu0 %2346 }
 0x736   : > { %v2379_v25 = vmul.f32 1.442695, %v2370_v21  ;;  %v2369_v39 = vsub.f32 %v2337_v60, %v2347_v38 }
 0x738   : > { %4666 = vpow2.f32 %v2379_v25  ;;  %v2377_v40 = vmul.f32 1.442695, %v2369_v39 }
 0x739   : > { %2783 = vrot.lane.b32.xlu0 %v5089_v12, %s4894_s22 }
 0x73a   : > { %4668 = vpow2.f32 %v2377_v40 }
 0x73d   : > { %2969 = vrot.lane.b32.xlu0 %v5096_v14, %s4893_s21 }
 0x745   : > { %v5530_v36 = vpop.eup %4666 }
 0x746   : > { %v2396_v37 = vsel %vm728_vm2, %v5530_v36, 0.0 }
 0x747   : > { %v5536_v52 = vpop.eup %4668 }
 0x748   : > { %v2393_v51 = vsel %vm728_vm2, %v5536_v52, 0.0 }
 0x754   : > { %2364 = vmax.xlane.f32.xlu1 %v2363_v35 }
 0x75c   : > { %2397 = vadd.xlane.f32.xlu0 %v2396_v37 }
 0x765   : > { %2872 = vrot.lane.b32.xlu1 %v5104_v17, %s4894_s22 }
 0x77c   : > { %v2362_v41 = vpop.xlane.xlu0 %2361 }
 0x77d   : > { %v2374_v42 = vsub.f32 %v2342_v2, %v2362_v41 }
 0x77f   : > { %v2387_v43 = vmul.f32 1.442695, %v2374_v42 }
 0x780   : > { %v2359_v44 = vpop.xlane.xlu0 %2358 }
 0x781   : > { %4670 = vpow2.f32 %v2387_v43  ;;  %v2373_v49 = vsub.f32 %v2341_v61, %v2359_v44 }
 0x783   : > { %v2385_v50 = vmul.f32 1.442695, %v2373_v49 }
 0x785   : > { %4672 = vpow2.f32 %v2385_v50 }
 0x789   : > { %2394 = vadd.xlane.f32.xlu1 %v2393_v51 }
 0x78e   : > { %v5540_v57 = vpop.eup %4670 }
 0x78f   : > { %v2408_v58 = vsel %vm728_vm2, %v5540_v57, 0.0 }
 0x790   : > { %v2356_v59 = vpop.xlane.xlu1 %2355  ;;  %2409 = vadd.xlane.f32.xlu0 %v2408_v58 }
 0x791   : > { %v2372_v60 = vsub.f32 %v2340_v20, %v2356_v59 }
 0x792   : > { %v5544_v62 = vpop.eup %4672  ;;  %v2353_v63 = vpop.xlane.xlu0 %2352 }
 0x793   : > { %v2383_v1 = vmul.f32 1.442695, %v2372_v60  ;;  %v2371_v2 = vsub.f32 %v5489_v23, %v2353_v63  ;;  %v2405_v4 = vsel %vm728_vm2, %v5544_v62, 0.0 }
 0x794   : > { %v2523_v61 = vpop.permute.xlu1 %2522  ;;  %2406 = vadd.xlane.f32.xlu0 %v2405_v4 }
 0x795   : > { %4674 = vpow2.f32 %v2383_v1  ;;  %v2381_v3 = vmul.f32 1.442695, %v2371_v2  ;;  %4413 = vmatprep.subr.mxu1 %v2523_v61 }
 0x796   : > { %4414 = vmatpush3.msra.mxu1 %v2523_v61 }
 0x797   : > { %4676 = vpow2.f32 %v2381_v3 }
 0x798   : > { %v2368_v5 = vpop.xlane.xlu0 %2367  ;;  %v2610_v24 = vpop.permute.xlu1 %2609 }
 0x799   : > { %v2376_v10 = vsub.f32 %v5494_v28, %v2368_v5 }
 0x79b   : > { %v2391_v20 = vmul.f32 1.442695, %v2376_v10 }
 0x79c   : > { %v2434_v22 = vpop.permute.xlu0 %2433  ;;  %v2608_v33 = vpop.permute.xlu1 %2607 }
 0x79d   : > { %4678 = vpow2.f32 %v2391_v20  ;;  %4408 = vmatprep.subr.mxu0 %v2434_v22 }
 0x79e   : > { %4409 = vmatpush3.msra.mxu0 %v2434_v22 }
 0x79f   : > { %4420 = vmatprep.subr.mxu0 %v2610_v24 }
 0x7a0   : > { %v2521_v23 = vpop.permute.xlu0 %2520  ;;  %v2788_v35 = vpop.permute.xlu1 %2787 }
 0x7a1   : > { %4415 = vmatprep.subr.mxu1 %v2521_v23 }
 0x7a2   : > { %v5550_v26 = vpop.eup %4674  ;;  %4416 = vmatpush3.msra.mxu1 %v2521_v23 }
 0x7a3   : > { %v2402_v27 = vsel %vm728_vm2, %v5550_v26, 0.0 }
 0x7a4   : > { %v5554_v0 = vpop.eup %4676  ;;  %v5556_v11 = vpop.permute.xlu0 %2696  ;;  %2403 = vadd.xlane.f32.xlu1 %v2402_v27 }
 0x7a5   : > { %4427 = vmatprep.subr.mxu1 %v5556_v11  ;;  %v2399_v28 = vsel %vm728_vm2, %v5554_v0, 0.0  ;;  %v2786_v37 = vpop.permute.xlu1 %2785 }
 0x7a8   : > { %2400 = vadd.xlane.f32.xlu1 %v2399_v28  ;;  %v2695_v49 = vpop.permute.xlu0 %2694 }
 0x7a9   : > { %v2782_v38 = vpop.permute.xlu1 %2781 }
 0x7aa   : > { %v5561_v21 = vpop.eup %4678 }
 0x7ab   : > { %v2414_v25 = vsel %vm728_vm2, %v5561_v21, 0.0 }
 0x7ac   : > { %2415 = vadd.xlane.f32.xlu0 %v2414_v25  ;;  %v5582_v50 = vpop.permute.xlu0 %2878 }
 0x7ad   : > { %v5575_v39 = vpop.permute.xlu1 %2876 }
 0x7b0   : > { %v2784_v51 = vpop.permute.xlu0 %2783 }
 0x7b9   : > { %2967 = vrot.lane.b32.xlu1 %v5102_v16, %s4893_s21 }
 0x7c2   : > { %2874 = vrot.lane.b32.xlu0 %v5098_v15, %s4894_s22 }
 0x7c6   : > { %3060 = vrot.lane.b32.xlu0 %v5110_v18, %s4893_s21 }
 0x7ca   : > { %2965 = vrot.lane.b32.xlu0 %v5096_v14, %s4894_s22 }
 0x7ce   : > { %3054 = vrot.lane.b32.xlu0 %v5114_v19, %s4894_s22 }
 0x7dd   : > { %v2365_v40 = vpop.xlane.xlu1 %2364 }
 0x7de   : > { %v2375_v41 = vsub.f32 %v5526_v34, %v2365_v40  ;;  %v2970_v34 = vpop.permute.xlu0 %2969 }
 0x7e0   : > { %v2389_v42 = vmul.f32 1.442695, %v2375_v41 }
 0x7e1   : > { %v5590_v58 = vpop.permute.xlu1 %2872 }
 0x7e2   : > { %4680 = vpow2.f32 %v2389_v42 }
 0x7e5   : > { %v2398_v59 = vpop.xlane.xlu0 %2397 }
 0x7e6   : > { %4682 = vrcp.f32 %v2398_v59 }
 0x7ef   : > { %v5578_v43 = vpop.eup %4680 }
 0x7f0   : > { %v2411_v44 = vsel %vm728_vm2, %v5578_v43, 0.0 }
 0x7f1   : > { %2412 = vadd.xlane.f32.xlu1 %v2411_v44 }
 0x7f3   : > { %v4683_v2 = vpop.eup %4682 }
 0x7f4   : > { %v2426_v3 = vmul.f32 %v4683_v2, %v5530_v36 }
 0x802   : > { %2963 = vrot.lane.b32.xlu1 %v5102_v16, %s4894_s22 }
 0x806   : > { %3058 = vrot.lane.b32.xlu1 %v5114_v19, %s4893_s21 }
 0x80a   : > { %3056 = vrot.lane.b32.xlu1 %v5110_v18, %s4894_s22 }
 0x812   : > { %v2395_v60 = vpop.xlane.xlu1 %2394 }
 0x813   : > { %4684 = vrcp.f32 %v2395_v60 }
 0x819   : > { %v2410_v63 = vpop.xlane.xlu0 %2409 }
 0x81a   : > { %4686 = vrcp.f32 %v2410_v63 }
 0x81d   : > { %v2407_v1 = vpop.xlane.xlu0 %2406 }
 0x81e   : > { %4688 = vrcp.f32 %v2407_v1 }
 0x820   : > { %v4685_v4 = vpop.eup %4684 }
 0x821   : > { %v2425_v61 = vmul.f32 %v4685_v4, %v5536_v52 }
 0x823   : > { %4410 = vmatprep.mubr.msk.f32.mxu0 %vm728_vm2, %v2425_v61 }
 0x824   : > { %4411 = vmatmul.mubr.msk.f32.vlgmr.msra.gmra.mxu0 %vm728_vm2, %v2426_v3 }
 0x825   : > { %4421 = vmatpush3.msra.mxu0 %v2610_v24 }
 0x826   : > { %4422 = vmatprep.subr.mxu0 %v2608_v33 }
 0x827   : > { %4423 = vmatpush3.msra.mxu0 %v2608_v33  ;;  %v4687_v5 = vpop.eup %4686 }
 0x828   : > { %4434 = vmatprep.subr.msk.mxu0 %vm369_vm1, %v2788_v35  ;;  %v2430_v23 = vmul.f32 %v4687_v5, %v5540_v57 }
 0x82b   : > { %v4689_v10 = vpop.eup %4688 }
 0x82c   : > { %v2429_v20 = vmul.f32 %v4689_v10, %v5544_v62 }
 0x82d   : > { %v2404_v22 = vpop.xlane.xlu1 %2403 }
 0x82e   : > { %4424 = vmatprep.mubr.msk.f32.mxu0 %vm728_vm2, %v2429_v20  ;;  %4690 = vrcp.f32 %v2404_v22 }
 0x82f   : > { %4425 = vmatmul.mubr.msk.f32.vlgmr.msra.gmra.mxu0 %vm728_vm2, %v2430_v23 }
 0x830   : > { %4435 = vmatpush3.xpose.msk.msra.mxu0 %vm369_vm1, %v2788_v35  ;;  %4438 = vmatprep.mubr.msk.f32.mxu0 %vm369_vm1, %v2782_v38 }
 0x831   : > { %4436 = vmatprep.subr.msk.mxu0 %vm369_vm1, %v2786_v37  ;;  %v2401_v36 = vpop.xlane.xlu1 %2400 }
 0x832   : > { %4692 = vrcp.f32 %v2401_v36 }
 0x834   : > { %4437 = vmatpush3.xpose.msk.msra.mxu0 %vm369_vm1, %v2786_v37 }
 0x835   : > { %4448 = vmatprep.subr.msk.mxu0 %vm369_vm1, %v2970_v34  ;;  %v2968_v52 = vpop.permute.xlu1 %2967  ;;  %v2416_v28 = vpop.xlane.xlu0 %2415 }
 0x836   : > { %4694 = vrcp.f32 %v2416_v28 }
 0x837   : > { %4439 = vmatmul.mubr.msk.f32.vlgmr.msra.gmra.mxu0 %vm369_vm1, %v2784_v51 }
 0x838   : > { %4449 = vmatpush3.xpose.msk.msra.mxu0 %vm369_vm1, %v2970_v34 }
 0x839   : > { %4450 = vmatprep.subr.msk.mxu0 %vm369_vm1, %v2968_v52  ;;  %v2875_v25 = vpop.permute.xlu0 %2874 }
 0x83b   : > { %v4691_v57 = vpop.eup %4690 }
 0x83c   : > { %4451 = vmatpush3.xpose.msk.msra.mxu0 %vm369_vm1, %v2968_v52  ;;  %v2428_v27 = vmul.f32 %v4691_v57, %v5550_v26 }
 0x83d   : > { %v3061_v33 = vpop.permute.xlu0 %3060 }
 0x83f   : > { %v4693_v62 = vpop.eup %4692 }
 0x840   : > { %v2427_v24 = vmul.f32 %v4693_v62, %v5554_v0 }
 0x841   : > { %v2966_v37 = vpop.permute.xlu0 %2965 }
 0x842   : > { %4417 = vmatprep.mubr.msk.f32.mxu1 %vm728_vm2, %v2427_v24 }
 0x843   : > { %4418 = vmatmul.mubr.msk.f32.vlgmr.msra.gmra.mxu1 %vm728_vm2, %v2428_v27  ;;  %v4695_v26 = vpop.eup %4694 }
 0x844   : > { %4428 = vmatpush3.msra.mxu1 %v5556_v11  ;;  %v2432_v40 = vmul.f32 %v4695_v26, %v5561_v21 }
 0x845   : > { %4429 = vmatprep.subr.mxu1 %v2695_v49  ;;  %v3055_v41 = vpop.permute.xlu0 %3054 }
 0x846   : > { %4430 = vmatpush3.msra.mxu1 %v2695_v49 }
 0x847   : > { %4441 = vmatprep.subr.msk.mxu1 %vm369_vm1, %v5582_v50 }
 0x87a   : > { %v2413_v35 = vpop.xlane.xlu1 %2412 }
 0x87b   : > { %4696 = vrcp.f32 %v2413_v35 }
 0x87e   : > { %v2964_v0 = vpop.permute.xlu1 %2963 }
 0x87f   : > { %4452 = vmatprep.mubr.msk.f32.mxu0 %vm369_vm1, %v2964_v0 }
 0x880   : > { %4453 = vmatmul.mubr.msk.f32.vlgmr.msra.gmra.mxu0 %vm369_vm1, %v2966_v37 }
 0x882   : > { %v3059_v21 = vpop.permute.xlu1 %3058 }
 0x886   : > { %v3057_v42 = vpop.permute.xlu1 %3056 }
 0x888   : > { %v4697_v38 = vpop.eup %4696 }
 0x889   : > { %v2431_v11 = vmul.f32 %v4697_v38, %v5578_v43 }
 0x88b   : > { %4431 = vmatprep.mubr.msk.f32.mxu1 %vm728_vm2, %v2431_v11 }
 0x88c   : > { %4432 = vmatmul.mubr.msk.f32.vlgmr.msra.gmra.mxu1 %vm728_vm2, %v2432_v40 }
 0x88d   : > { %4442 = vmatpush3.xpose.msk.msra.mxu1 %vm369_vm1, %v5582_v50  ;;  %4445 = vmatprep.mubr.msk.f32.mxu1 %vm369_vm1, %v5590_v58 }
 0x88e   : > { %4443 = vmatprep.subr.msk.mxu1 %vm369_vm1, %v5575_v39 }
 0x891   : > { %4444 = vmatpush3.xpose.msk.msra.mxu1 %vm369_vm1, %v5575_v39 }
 0x892   : > { %4455 = vmatprep.subr.msk.mxu1 %vm369_vm1, %v3061_v33 }
 0x894   : > { %4446 = vmatmul.mubr.msk.f32.vlgmr.msra.gmra.mxu1 %vm369_vm1, %v2875_v25 }
 0x895   : > { %4456 = vmatpush3.xpose.msk.msra.mxu1 %vm369_vm1, %v3061_v33  ;;  %4459 = vmatprep.mubr.msk.f32.mxu1 %vm369_vm1, %v3055_v41 }
 0x896   : > { %4457 = vmatprep.subr.msk.mxu1 %vm369_vm1, %v3059_v21 }
 0x899   : > { %4458 = vmatpush3.xpose.msk.msra.mxu1 %vm369_vm1, %v3059_v21 }
 0x89c   : > { %4460 = vmatmul.mubr.msk.f32.vlgmr.msra.gmra.mxu1 %vm369_vm1, %v3057_v42 }
 0x8e4   : > { %v5638_v43 = vpop.f32.mrf.mxu0 }
 0x8e6   : > { %v5640_v39 = vpop.f32.mrf.mxu0 }
 0x8ef   : > { %v5642_v44 = vpop.f32.mrf.mxu0 }
 0x8f1   : > { %v5644_v49 = vpop.f32.mrf.mxu0 }
 0x8f7   : > { %v4440_v50 = vpop.f32.mrf.mxu0 }
 0x8f8   : > { %v3146_v51 = vmul.f32 0.35355338, %v4440_v50 }
 0x8f9   : > { %v2863_v34 = vpop.f32.mrf.mxu0 }
 0x8fa   : > { %v3145_v58 = vmul.f32 0.35355338, %v2863_v34  ;;  %v3156_v59 = vsel %vm728_vm2, %v3146_v51, -inf }
 0x8fb   : > { %3157 = vmax.xlane.f32.xlu1 %v3156_v59 }
 0x8fc   : > { %v3153_v60 = vsel %vm728_vm2, %v3145_v58, -inf }
 0x8fd   : > { %3154 = vmax.xlane.f32.xlu0 %v3153_v60 }
 0x903   : > { %v5649_v61 = vpop.f32.mrf.mxu1 }
 0x905   : > { %v5651_v3 = vpop.f32.mrf.mxu1 }
 0x940   : > { %v4454_v63 = vpop.f32.mrf.mxu0 }
 0x941   : > { %v3150_v62 = vmul.f32 0.35355338, %v4454_v63 }
 0x942   : > { %v3045_v1 = vpop.f32.mrf.mxu0 }
 0x943   : > { %v3149_v2 = vmul.f32 0.35355338, %v3045_v1  ;;  %v3168_v33 = vsel %vm728_vm2, %v3150_v62, -inf }
 0x945   : > { %v3165_v4 = vsel %vm728_vm2, %v3149_v2, -inf }
 0x946   : > { %3166 = vmax.xlane.f32.xlu1 %v3165_v4 }
 0x94c   : > { %v5653_v5 = vpop.f32.mrf.mxu1 }
 0x94e   : > { %v5655_v10 = vpop.f32.mrf.mxu1 }
 0x954   : > { %v4447_v20 = vpop.f32.mrf.mxu1 }
 0x955   : > { %v3148_v36 = vmul.f32 0.35355338, %v4447_v20 }
 0x956   : > { %v2954_v22 = vpop.f32.mrf.mxu1 }
 0x957   : > { %v3147_v23 = vmul.f32 0.35355338, %v2954_v22  ;;  %v3162_v24 = vsel %vm728_vm2, %v3148_v36, -inf }
 0x959   : > { %v3159_v52 = vsel %vm728_vm2, %v3147_v23, -inf }
 0x95a   : > { %3160 = vmax.xlane.f32.xlu0 %v3159_v52 }
 0x95c   : > { %v4461_v57 = vpop.f32.mrf.mxu1 }
 0x95d   : > { %v3152_v25 = vmul.f32 0.35355338, %v4461_v57 }
 0x95e   : > { %3163 = vmax.xlane.f32.xlu0 %v3162_v24  ;;  %v3136_v27 = vpop.f32.mrf.mxu1 }
 0x95f   : > { %v3151_v28 = vmul.f32 0.35355338, %v3136_v27  ;;  %v3174_v0 = vsel %vm728_vm2, %v3152_v25, -inf }
 0x961   : > { %v3171_v35 = vsel %vm728_vm2, %v3151_v28, -inf }
 0x962   : > { %3169 = vmax.xlane.f32.xlu0 %v3168_v33  ;;  %3172 = vmax.xlane.f32.xlu1 %v3171_v35 }
 0x966   : > { %3175 = vmax.xlane.f32.xlu0 %v3174_v0 }
 0x973   : > { %3243 = vrot.lane.b32.xlu1 %v5089_v12, %s4895_s17 }
 0x977   : > { %3330 = vrot.lane.b32.xlu1 %v5098_v15, %s4895_s17 }
 0x97b   : > { %3328 = vrot.lane.b32.xlu1 %v5104_v17, %s4895_s17 }
 0x97c   : > { %3241 = vrot.lane.b32.xlu0 %v5092_v13, %s4895_s17 }
 0x97f   : > { %3415 = vrot.lane.b32.xlu1 %v5102_v16, %s4895_s17 }
 0x980   : > { %3417 = vrot.lane.b32.xlu0 %v5096_v14, %s4895_s17 }
 0x984   : > { %v3158_v37 = vpop.xlane.xlu1 %3157 }
 0x985   : > { %v3178_v26 = vsub.f32 %v3146_v51, %v3158_v37 }
 0x986   : > { %v3155_v38 = vpop.xlane.xlu0 %3154 }
 0x987   : > { %v3187_v11 = vmul.f32 1.442695, %v3178_v26  ;;  %v3177_v12 = vsub.f32 %v3145_v58, %v3155_v38 }
 0x989   : > { %4698 = vpow2.f32 %v3187_v11  ;;  %v3185_v40 = vmul.f32 1.442695, %v3177_v12 }
 0x98b   : > { %4700 = vpow2.f32 %v3185_v40 }
 0x996   : > { %v5674_v15 = vpop.eup %4698 }
 0x997   : > { %v3204_v17 = vsel %vm728_vm2, %v5674_v15, 0.0 }
 0x998   : > { %v5678_v13 = vpop.eup %4700 }
 0x999   : > { %v3201_v16 = vsel %vm728_vm2, %v5678_v13, 0.0 }
 0x99f   : > { %3205 = vadd.xlane.f32.xlu0 %v3204_v17 }
 0x9a3   : > { %3202 = vadd.xlane.f32.xlu1 %v3201_v16 }
 0x9cf   : > { %v3167_v14 = vpop.xlane.xlu1 %3166 }
 0x9d0   : > { %v3181_v41 = vsub.f32 %v3149_v2, %v3167_v14 }
 0x9d2   : > { %v3193_v21 = vmul.f32 1.442695, %v3181_v41 }
 0x9d4   : > { %4702 = vpow2.f32 %v3193_v21 }
 0x9e1   : > { %v5682_v42 = vpop.eup %4702 }
 0x9e2   : > { %v3213_v50 = vsel %vm728_vm2, %v5682_v42, 0.0 }
 0x9e3   : > { %v3161_v51 = vpop.xlane.xlu0 %3160  ;;  %3214 = vadd.xlane.f32.xlu1 %v3213_v50 }
 0x9e4   : > { %v3179_v34 = vsub.f32 %v3147_v23, %v3161_v51 }
 0x9e6   : > { %v3189_v58 = vmul.f32 1.442695, %v3179_v34 }
 0x9e7   : > { %v3164_v59 = vpop.xlane.xlu0 %3163 }
 0x9e8   : > { %4704 = vpow2.f32 %v3189_v58  ;;  %v3180_v60 = vsub.f32 %v3148_v36, %v3164_v59 }
 0x9ea   : > { %v3191_v22 = vmul.f32 1.442695, %v3180_v60 }
 0x9eb   : > { %v3170_v63 = vpop.xlane.xlu0 %3169  ;;  %v3173_v1 = vpop.xlane.xlu1 %3172 }
 0x9ec   : > { %v3182_v4 = vsub.f32 %v3150_v62, %v3170_v63  ;;  %v3183_v20 = vsub.f32 %v3151_v28, %v3173_v1 }
 0x9ee   : > { %v3195_v2 = vmul.f32 1.442695, %v3182_v4  ;;  %v3197_v52 = vmul.f32 1.442695, %v3183_v20 }
 0x9ef   : > { %v3176_v57 = vpop.xlane.xlu0 %3175  ;;  %v3244_v24 = vpop.permute.xlu1 %3243 }
 0x9f0   : > { %4706 = vpow2.f32 %v3195_v2  ;;  %v3184_v27 = vsub.f32 %v3152_v25, %v3176_v57  ;;  %4462 = vmatprep.subr.mxu0 %v3244_v24 }
 0x9f1   : > { %4708 = vpow2.f32 %v3197_v52  ;;  %4463 = vmatpush3.msra.mxu0 %v3244_v24 }
 0x9f2   : > { %4710 = vpow2.f32 %v3191_v22  ;;  %v3199_v23 = vmul.f32 1.442695, %v3184_v27 }
 0x9f3   : > { %v3242_v33 = vpop.permute.xlu0 %3241  ;;  %v3331_v35 = vpop.permute.xlu1 %3330 }
 0x9f4   : > { %4464 = vmatprep.subr.mxu0 %v3242_v33  ;;  %4469 = vmatprep.subr.mxu1 %v3331_v35  ;;  %4712 = vpow2.f32 %v3199_v23 }
 0x9f5   : > { %v5686_v36 = vpop.eup %4704  ;;  %4465 = vmatpush3.msra.mxu0 %v3242_v33  ;;  %4470 = vmatpush3.msra.mxu1 %v3331_v35 }
 0x9f6   : > { %v3207_v62 = vsel %vm728_vm2, %v5686_v36, 0.0 }
 0x9f7   : > { %v3418_v28 = vpop.permute.xlu0 %3417  ;;  %3208 = vadd.xlane.f32.xlu1 %v3207_v62  ;;  %v3329_v25 = vpop.permute.xlu1 %3328 }
 0x9f8   : > { %4471 = vmatprep.subr.mxu1 %v3329_v25  ;;  %4476 = vmatprep.subr.mxu0 %v3418_v28 }
 0x9f9   : > { %4472 = vmatpush3.msra.mxu1 %v3329_v25 }
 0x9fd   : > { %v5690_v0 = vpop.eup %4706 }
 0x9fe   : > { %v5692_v37 = vpop.eup %4708  ;;  %v3216_v26 = vsel %vm728_vm2, %v5690_v0, 0.0 }
 0x9ff   : > { %v5696_v38 = vpop.eup %4710  ;;  %3217 = vadd.xlane.f32.xlu0 %v3216_v26  ;;  %v3219_v11 = vsel %vm728_vm2, %v5692_v37, 0.0 }
 0xa00   : > { %3220 = vadd.xlane.f32.xlu1 %v3219_v11  ;;  %v3210_v12 = vsel %vm728_vm2, %v5696_v38, 0.0 }
 0xa01   : > { %v5702_v40 = vpop.eup %4712 }
 0xa02   : > { %v3222_v17 = vsel %vm728_vm2, %v5702_v40, 0.0 }
 0xa03   : > { %3211 = vadd.xlane.f32.xlu0 %v3210_v12 }
 0xa07   : > { %3223 = vadd.xlane.f32.xlu0 %v3222_v17 }
 0xa11   : > { %3502 = vrot.lane.b32.xlu1 %v5114_v19, %s4895_s17  ;;  %v3416_v19 = vpop.permute.xlu1 %3415 }
 0xa15   : > { %3599 = vrot.lane.b32.xlu1 %v5469_v53, %s4896_s23 }
 0xa19   : > { %3631 = vrot.lane.b32.xlu1 %v5638_v43, %s4897_s24 }
 0xa1d   : > { %3603 = vrot.lane.b32.xlu1 %v5481_v6, %s4896_s23  ;;  %3504 = vrot.lane.b32.xlu0 %v5110_v18, %s4895_s17 }
 0xa21   : > { %3635 = vrot.lane.b32.xlu1 %v5649_v61, %s4897_s24  ;;  %3597 = vrot.lane.b32.xlu0 %v5471_v54, %s4896_s23 }
 0xa25   : > { %3607 = vrot.lane.b32.xlu1 %v5473_v55, %s4896_s23  ;;  %3629 = vrot.lane.b32.xlu0 %v5640_v39, %s4897_s24 }
 0xa28   : > { %v3206_v53 = vpop.xlane.xlu0 %3205 }
 0xa29   : > { %3639 = vrot.lane.b32.xlu1 %v5642_v44, %s4897_s24  ;;  %3601 = vrot.lane.b32.xlu0 %v5483_v7, %s4896_s23  ;;  %4714 = vrcp.f32 %v3206_v53 }
 0xa2c   : > { %v3203_v18 = vpop.xlane.xlu1 %3202 }
 0xa2d   : > { %3611 = vrot.lane.b32.xlu1 %v5485_v8, %s4896_s23  ;;  %4716 = vrcp.f32 %v3203_v18  ;;  %3633 = vrot.lane.b32.xlu0 %v5651_v3, %s4897_s24 }
 0xa31   : > { %3605 = vrot.lane.b32.xlu0 %v5475_v56, %s4896_s23 }
 0xa35   : > { %3637 = vrot.lane.b32.xlu0 %v5644_v49, %s4897_s24 }
 0xa36   : > { %v4715_v54 = vpop.eup %4714 }
 0xa37   : > { %v3234_v7 = vmul.f32 %v4715_v54, %v5674_v15 }
 0xa39   : > { %3609 = vrot.lane.b32.xlu0 %v5487_v9, %s4896_s23 }
 0xa3a   : > { %v4717_v55 = vpop.eup %4716 }
 0xa3b   : > { %v3233_v6 = vmul.f32 %v4717_v55, %v5678_v13 }
 0xa3d   : > { %4466 = vmatprep.mubr.msk.f32.mxu0 %vm728_vm2, %v3233_v6 }
 0xa3e   : > { %4467 = vmatmul.mubr.msk.f32.vlgmr.msra.gmra.mxu0 %vm728_vm2, %v3234_v7 }
 0xa3f   : > { %4477 = vmatpush3.msra.mxu0 %v3418_v28 }
 0xa40   : > { %4478 = vmatprep.subr.mxu0 %v3416_v19 }
 0xa41   : > { %4479 = vmatpush3.msra.mxu0 %v3416_v19 }
 0xa6c   : > { %v3215_v56 = vpop.xlane.xlu1 %3214 }
 0xa6d   : > { %4718 = vrcp.f32 %v3215_v56 }
 0xa7a   : > { %v4719_v8 = vpop.eup %4718 }
 0xa7b   : > { %v3237_v43 = vmul.f32 %v4719_v8, %v5682_v42 }
 0xa7d   : > { %4480 = vmatprep.mubr.msk.f32.mxu0 %vm728_vm2, %v3237_v43 }
 0xa80   : > { %v3209_v9 = vpop.xlane.xlu1 %3208 }
 0xa81   : > { %4720 = vrcp.f32 %v3209_v9 }
 0xa88   : > { %v3218_v39 = vpop.xlane.xlu0 %3217 }
 0xa89   : > { %4722 = vrcp.f32 %v3218_v39  ;;  %v3221_v44 = vpop.xlane.xlu1 %3220 }
 0xa8a   : > { %4724 = vrcp.f32 %v3221_v44 }
 0xa8c   : > { %v3212_v49 = vpop.xlane.xlu0 %3211 }
 0xa8d   : > { %4726 = vrcp.f32 %v3212_v49  ;;  %v3503_v61 = vpop.permute.xlu1 %3502 }
 0xa8e   : > { %v4721_v3 = vpop.eup %4720 }
 0xa8f   : > { %v3235_v15 = vmul.f32 %v4721_v3, %v5686_v36 }
 0xa90   : > { %v3224_v13 = vpop.xlane.xlu0 %3223 }
 0xa91   : > { %4728 = vrcp.f32 %v3224_v13  ;;  %v5745_v16 = vpop.permute.xlu1 %3599  ;;  %4473 = vmatprep.mubr.msk.f32.mxu1 %vm728_vm2, %v3235_v15 }
 0xa92   : > { %v3686_v6 = vsel %vm369_vm1, %v5298_v29, %v5745_v16 }
 0xa94   : > { %v3505_v14 = vpop.permute.xlu0 %3504 }
 0xa95   : > { %v5748_v41 = vpop.permute.xlu1 %3631  ;;  %4483 = vmatprep.subr.mxu1 %v3505_v14 }
 0xa96   : > { %v4723_v21 = vpop.eup %4722 }
 0xa97   : > { %v3238_v42 = vmul.f32 %v4723_v21, %v5690_v0  ;;  %v4725_v51 = vpop.eup %4724  ;;  %v3713_v0 = vld [vmem:[#allocation7 + $0x18] sm:$0xff] }
 0xa98   : > { %v5751_v50 = vpop.permute.xlu0 %3597  ;;  %v3239_v63 = vmul.f32 %v4725_v51, %v5692_v37  ;;  %v3712_v37 = vld [vmem:[#allocation7 + $0x10] sm:$0xff]  ;;  %4490 = vmatprep.subr.mxu0 %v3713_v0 }
 0xa99   : > { %v3604_v34 = vpop.permute.xlu1 %3603  ;;  %4481 = vmatmul.mubr.msk.f32.vlgmr.msra.gmra.mxu0 %vm728_vm2, %v3238_v42  ;;  %v3685_v54 = vsel %vm369_vm1, %v5300_v30, %v5751_v50 }
 0xa9a   : > { %v4727_v58 = vpop.eup %4726  ;;  %v3688_v1 = vsel %vm369_vm1, %v5310_v45, %v3604_v34  ;;  %4491 = vmatpush3.msra.mxu0 %v3713_v0 }
 0xa9b   : > { %v3236_v59 = vmul.f32 %v4727_v58, %v5696_v38  ;;  %4492 = vmatprep.subr.mxu0 %v3712_v37 }
 0xa9c   : > { %v5755_v60 = vpop.permute.xlu0 %3629  ;;  %4493 = vmatpush3.msra.mxu0 %v3712_v37 }
 0xa9d   : > { %v3636_v4 = vpop.permute.xlu1 %3635  ;;  %4474 = vmatmul.mubr.msk.f32.vlgmr.msra.gmra.mxu1 %vm728_vm2, %v3236_v59 }
 0xa9e   : > { %v4729_v20 = vpop.eup %4728  ;;  %v5762_v22 = vsel %vm728_vm2, %v3688_v1, %v3636_v4  ;;  %4484 = vmatpush3.msra.mxu1 %v3505_v14  ;;  %4487 = vmatprep.mubr.msk.f32.mxu1 %vm728_vm2, %v3239_v63 }
 0xa9f   : > { %4485 = vmatprep.subr.mxu1 %v3503_v61  ;;  %v3240_v2 = vmul.f32 %v4729_v20, %v5702_v40 }
 0xaa0   : > { %4486 = vmatpush3.msra.mxu1 %v3503_v61  ;;  %v3602_v52 = vpop.permute.xlu0 %3601 }
 0xaa1   : > { %v3608_v57 = vpop.permute.xlu1 %3607  ;;  %4488 = vmatmul.mubr.msk.f32.vlgmr.msra.gmra.mxu1 %vm728_vm2, %v3240_v2  ;;  %v3687_v45 = vsel %vm369_vm1, %v5312_v46, %v3602_v52  ;;  %v3711_v46 = vld [vmem:[#allocation7 + $0x8] sm:$0xff] }
 0xaa2   : > { %v3690_v27 = vsel %vm369_vm1, %v5302_v31, %v3608_v57  ;;  %4494 = vmatprep.subr.mxu0 %v3711_v46  ;;  %v3710_v31 = vld [vmem:[#allocation7] sm:$0xff] }
 0xaa3   : > { %4495 = vmatpush3.msra.mxu0 %v3711_v46 }
 0xaa4   : > { %v3634_v24 = vpop.permute.xlu0 %3633  ;;  %4496 = vmatprep.subr.mxu0 %v3710_v31 }
 0xaa5   : > { %v3695_v23 = vsel %vm728_vm2, %v3687_v45, %v3634_v24  ;;  %v3640_v33 = vpop.permute.xlu1 %3639  ;;  %4497 = vmatpush3.msra.mxu0 %v3710_v31 }
 0xaa6   : > { %v3698_v35 = vsel %vm728_vm2, %v3690_v27, %v3640_v33 }
 0xaa8   : > { %v3606_v36 = vpop.permute.xlu0 %3605 }
 0xaa9   : > { %v3689_v62 = vsel %vm369_vm1, %v5304_v32, %v3606_v36  ;;  %v3612_v53 = vpop.permute.xlu1 %3611 }
 0xaaa   : > { %v3692_v14 = vsel %vm369_vm1, %v5314_v47, %v3612_v53 }
 0xaac   : > { %v3638_v28 = vpop.permute.xlu0 %3637 }
 0xaad   : > { %v3697_v25 = vsel %vm728_vm2, %v3689_v62, %v3638_v28 }
 0xab0   : > { %v3610_v18 = vpop.permute.xlu0 %3609 }
 0xab1   : > { %v3691_v13 = vsel %vm369_vm1, %v5316_v48, %v3610_v18 }
 0xafe   : > { %v4468_v26 = vpop.f32.mrf.mxu0 }
 0xaff   : > { %3663 = vrot.lane.b32.xlu1 %v4468_v26, %s4898_s26 }
 0xb00   : > { %v3319_v38 = vpop.f32.mrf.mxu0 }
 0xb01   : > { %3661 = vrot.lane.b32.xlu0 %v3319_v38, %s4898_s26 }
 0xb59   : > { %v4482_v32 = vpop.f32.mrf.mxu0 }
 0xb5a   : > { %3671 = vrot.lane.b32.xlu1 %v4482_v32, %s4898_s26 }
 0xb5b   : > { %v3493_v11 = vpop.f32.mrf.mxu0 }
 0xb5c   : > { %3669 = vrot.lane.b32.xlu0 %v3493_v11, %s4898_s26 }
 0xb5d   : > { %v4475_v12 = vpop.f32.mrf.mxu1 }
 0xb5e   : > { %3667 = vrot.lane.b32.xlu1 %v4475_v12, %s4898_s26 }
 0xb5f   : > { %v3406_v40 = vpop.f32.mrf.mxu1 }
 0xb60   : > { %3665 = vrot.lane.b32.xlu0 %v3406_v40, %s4898_s26 }
 0xb61   : > { %v4489_v17 = vpop.f32.mrf.mxu1 }
 0xb62   : > { %3643 = vrot.lane.b32.xlu1 %v5653_v5, %s4897_s24  ;;  %v3693_v5 = vsel %vm728_vm2, %v3685_v54, %v5755_v60 }
 0xb63   : > { %v3580_v19 = vpop.f32.mrf.mxu1 }
 0xb64   : > { %3641 = vrot.lane.b32.xlu0 %v5655_v10, %s4897_s24  ;;  %v3694_v10 = vsel %vm728_vm2, %v3686_v6, %v5748_v41 }
 0xb66   : > { %3675 = vrot.lane.b32.xlu1 %v4489_v17, %s4898_s26 }
 0xb68   : > { %3673 = vrot.lane.b32.xlu0 %v3580_v19, %s4898_s26 }
 0xb71   : > { %v3664_v55 = vpop.permute.xlu1 %3663 }
 0xb72   : > { %v3703_v8 = vsel %vm3701_vm3, %v3694_v10, %v3664_v55 }
 0xb73   : > { %v3662_v7 = vpop.permute.xlu0 %3661 }
 0xb74   : > { %v3702_v56 = vsel %vm3701_vm3, %v3693_v5, %v3662_v7 }
 0xb75   : > { %4498 = vmatprep.mubr.msk.f32.mxu0 %vm233_vm0, %v3702_v56 }
 0xb76   : > { %4499 = vmatmul.mubr.msk.f32.vlgmr.msra.gmra.mxu0 %vm233_vm0, %v3703_v8 }
 0xbcc   : > { %v3672_v30 = vpop.permute.xlu1 %3671 }
 0xbcd   : > { %v3707_v15 = vsel %vm3701_vm3, %v3698_v35, %v3672_v30 }
 0xbce   : > { %v3670_v43 = vpop.permute.xlu0 %3669 }
 0xbcf   : > { %v3706_v61 = vsel %vm3701_vm3, %v3697_v25, %v3670_v43 }
 0xbd0   : > { %v3668_v9 = vpop.permute.xlu1 %3667 }
 0xbd1   : > { %v3705_v44 = vsel %vm3701_vm3, %v5762_v22, %v3668_v9 }
 0xbd2   : > { %v3666_v39 = vpop.permute.xlu0 %3665 }
 0xbd3   : > { %v3704_v29 = vsel %vm3701_vm3, %v3695_v23, %v3666_v39 }
 0xbd4   : > { %4501 = vmatprep.mubr.msk.f32.mxu0 %vm233_vm0, %v3704_v29  ;;  %v3644_v49 = vpop.permute.xlu1 %3643 }
 0xbd5   : > { %4502 = vmatmul.mubr.msk.f32.gmra.mxu0 %vm233_vm0, %v3705_v44  ;;  %v3700_v42 = vsel %vm728_vm2, %v3692_v14, %v3644_v49 }
 0xbd6   : > { %v3642_v3 = vpop.permute.xlu0 %3641  ;;  %4504 = vmatprep.mubr.msk.f32.mxu0 %vm233_vm0, %v3706_v61 }
 0xbd7   : > { %v3699_v41 = vsel %vm728_vm2, %v3691_v13, %v3642_v3 }
 0xbd8   : > { %v3676_v16 = vpop.permute.xlu1 %3675 }
 0xbd9   : > { %4505 = vmatmul.mubr.msk.f32.gmra.mxu0 %vm233_vm0, %v3707_v15  ;;  %v3709_v51 = vsel %vm3701_vm3, %v3700_v42, %v3676_v16 }
 0xbda   : > { %v3674_v21 = vpop.permute.xlu0 %3673 }
 0xbdb   : > { %v3708_v50 = vsel %vm3701_vm3, %v3699_v41, %v3674_v21 }
 0xbdc   : > { %4507 = vmatprep.mubr.msk.f32.mxu0 %vm233_vm0, %v3708_v50 }
 0xbdd   : > { %4508 = vmatmul.mubr.msk.f32.gmra.mxu0 %vm233_vm0, %v3709_v51 }
 0xc36   : > { %v4500_v48 = vpop.f32.mrf.mxu0 }
 0xc37   : > { %3844 = vst.msk [vmem:[%s218_s8 + $0x8] sm:$0xff] %vm233_vm0, %v4500_v48 }
 0xc38   : > { %v3804_v47 = vpop.f32.mrf.mxu0 }
 0xc39   : > { %3843 = vst.msk [vmem:[%s218_s8] sm:$0xff] %vm233_vm0, %v3804_v47 }
 0xc95   : > { %v4503_v34 = vpop.f32.mrf.mxu0 }
 0xc96   : > { %3846 = vst.msk [vmem:[%s218_s8 + $0x18] sm:$0xff] %vm233_vm0, %v4503_v34 }
 0xc97   : > { %v3814_v58 = vpop.f32.mrf.mxu0 }
 0xc98   : > { %3845 = vst.msk [vmem:[%s218_s8 + $0x10] sm:$0xff] %vm233_vm0, %v3814_v58 }
 0xc99   : > { %v4506_v59 = vpop.f32.mrf.mxu0 }
 0xc9a   : > { %3848 = vst.msk [vmem:[%s218_s8 + $0x28] sm:$0xff] %vm233_vm0, %v4506_v59 }
 0xc9b   : > { %v3824_v60 = vpop.f32.mrf.mxu0 }
 0xc9c   : > { %3847 = vst.msk [vmem:[%s218_s8 + $0x20] sm:$0xff] %vm233_vm0, %v3824_v60 }
 0xc9d   : > { %v4509_v63 = vpop.f32.mrf.mxu0 }
 0xc9e   : > { %3850 = vst.msk [vmem:[%s218_s8 + $0x38] sm:$0xff] %vm233_vm0, %v4509_v63 }
 0xc9f   : > { %v3834_v1 = vpop.f32.mrf.mxu0 }
 0xca0   : > { %3849 = vst.msk [vmem:[%s218_s8 + $0x30] sm:$0xff] %vm233_vm0, %v3834_v1 }
 0xca1   : > { %4823 = shalt.err (!%p4820_p3)
}
 0xca2   : > { %s4824_s9 = scalar_lea.hbm %s5828_s27, 1024  ;;  %s4828_s17 = scalar_lea.hbm %s5876_s3, 2048 }
 0xca3   : > { %p4825_p11 = scmp.ne.s32.totalorder %s5828_s27, %s4824_s9  ;;  %p4829_p4 = scmp.lt.s32.totalorder %s5828_s27, %s5876_s3 }
 0xca4   : > { %p4830_p6 = scmp.lt.s32.totalorder %s4828_s17, %s4824_s9 }
 0xca5   : > { %p4826_p9 = pnand %p4825_p11, %p5891_p2 }
 0xca6   : > { %p4831_p8 = por %p4830_p6, %p4829_p4 }
 0xca7   : > { %p4827_p1 = pneg %p4826_p9 }
 0xca9   : > { %p4832_p5 = pnand %p4831_p8, %p4827_p1 }
 0xcab   : > { %4835 = shalt.err (!%p4832_p5)
}
 0xcac   : > { %s4900_s8 = smov 128  }
 0xcad   : > { %4528 = dma.vmem_to_hbm [thread:$0]  (%p5891_p2), %s5822_s30, 1024, %s5828_s27, %s3852_s28, %s4900_s8, %s4900_s8, %s4896_s23  }
 0xcae PF: > { %s3881_s18 = sand.u32 1, %s4866_s12   ;;  %p5892_p7 = scmp.ne.s32.totalorder %s5882_s19, 0 }
 0xcaf   : > { %p5893_p12 = scmp.ge.s32.totalorder %s4878_s15, 2  ;;  %s3882_s6 = scalar_lea.sflag [#allocation4], %s3881_s18 }
 0xcb1   : > { %p4542_p13 = pnand %p5893_p12, %p5892_p7 }
 0xcb3   : > { %p4543_p0 = pneg %p4542_p13 }
 0xcb5   : > { %4861 = dma.done.wait (%p4543_p0), %s3882_s6, 1024  }
 0xcb6   : > { %4863 = vsyncadd (%p4543_p0), %s3882_s6, 4294966272  ;;  %p17_p10 = scmp.ge.s32.totalorder %s4999_s7, 4   ;;  %s5894_s12 = smov %s4870_s13 }
 0xcb7   : > { %s5895_s13 = smov %s4874_s14  ;;  %s5896_s14 = smov %s5015_s11 }
 0xcb8   : > { %s5897_s15 = smov %s4999_s7  ;;  %19 = sbr.rel (!%p17_p10) target bundleno = 6 (0x6), region = 85 }
 0xcbd   :  { %3887 = vsyncpa [#allocation3], 1 }
 0xcbe   :  { %3889 = vsyncpa [#allocation3 + $0x1], 1 }
 0xcbf   :  { %3890 = vsyncpa [#allocation6], 1 }
 0xcc0   :  { %3891 = vsyncpa [#allocation4], 1 }
 0xcc1   :  { %3893 = vsyncpa [#allocation4 + $0x1], 1 }

</bundles_post_ra>
